<compile_context>
chip_gen: v7x
topology: tpu7x:2x2x1
jax: 0.10.0
libtpu: 0.0.40
codegen_flags: <defaults>
</compile_context>

<pallas_src>
import functools

import jax
import jax.numpy as jnp
from jax.experimental import pallas as pl
from jax.experimental.pallas import tpu as pltpu


def _layernorm(x, w, b, eps):
    # PyTorch LayerNorm over last dim, biased variance, f32 math.
    mu = jnp.mean(x, axis=-1, keepdims=True)
    xc = x - mu
    var = jnp.mean(xc * xc, axis=-1, keepdims=True)
    inv = jax.lax.rsqrt(var + eps)
    return xc * inv * w + b


def encoder_layer_kernel(
    x_ref,
    wqkv_ref, bqkv_ref, wo_ref, bo_ref,
    ln1w_ref, ln1b_ref,
    w1_ref, b1_ref, w2_ref, b2_ref,
    ln2w_ref, ln2b_ref,
    out_ref, attn_ref,
    *, n_head, d_k, d_v,
):
    BB, L, d_model = x_ref.shape
    M = BB * L

    x = x_ref[...].reshape(M, d_model)            # f32, kept for residual
    x_bf = x.astype(jnp.bfloat16)

    # --- fused Q|K|V projection: one MXU pass, N = 3*n_head*d_k ---
    # (1/sqrt(d_k) temperature is pre-folded into the Q columns/bias.)
    qkv = jnp.dot(x_bf, wqkv_ref[...],
                  preferred_element_type=jnp.float32) + bqkv_ref[...]

    qk_w = n_head * d_k
    pv_heads = []
    attn_heads = []
    for h in range(n_head):  # static unrolled loop (n_head is small)
        qh = qkv[:, h * d_k:(h + 1) * d_k].reshape(BB, L, d_k).astype(jnp.bfloat16)
        kh = qkv[:, qk_w + h * d_k:qk_w + (h + 1) * d_k].reshape(BB, L, d_k).astype(jnp.bfloat16)
        vh = qkv[:, 2 * qk_w + h * d_v:2 * qk_w + (h + 1) * d_v].reshape(BB, L, d_v).astype(jnp.bfloat16)

        # contraction on the last dims: no XLU transpose of K
        scores = jnp.einsum('bqd,bkd->bqk', qh, kh,
                            preferred_element_type=jnp.float32)
        # numerically-stable softmax over last axis (f32)
        scores = scores - jnp.max(scores, axis=-1, keepdims=True)
        e = jnp.exp(scores)
        # exact reciprocal: stored attention rows sum to ~1 (user-facing map)
        attn = e * pl.reciprocal(jnp.sum(e, axis=-1, keepdims=True))
        attn_heads.append(attn.reshape(BB, L * L))

        pv = jnp.einsum('bqk,bkd->bqd', attn.astype(jnp.bfloat16), vh,
                        preferred_element_type=jnp.float32)
        pv_heads.append(pv.reshape(M, d_v))

    # lane-dense attention-map store: (BB, n_head*L*L) in one unmasked write
    attn_ref[...] = jnp.concatenate(attn_heads, axis=-1)

    # single output projection with full contraction depth K = n_head*d_v
    pv_all = jnp.concatenate(pv_heads, axis=-1).astype(jnp.bfloat16)
    att_out = jnp.dot(pv_all, wo_ref[...],
                      preferred_element_type=jnp.float32) + bo_ref[...]

    # --- residual + LayerNorm 1 (f32) ---
    out1 = _layernorm(x + att_out, ln1w_ref[...], ln1b_ref[...], 1e-6)

    # --- position-wise feed-forward ---
    # bias-add + ReLU in bf16 (hidden is cast to bf16 for w2 anyway;
    # halves elementwise traffic on the (M, d_inner) tile on v6e/v7x)
    hid = jnp.dot(out1.astype(jnp.bfloat16), w1_ref[...],
                  preferred_element_type=jnp.float32)
    hid = jnp.maximum(hid.astype(jnp.bfloat16) + b1_ref[...], 0.0)
    ffn = jnp.dot(hid, w2_ref[...],
                  preferred_element_type=jnp.float32) + b2_ref[...]

    # --- residual + LayerNorm 2 (f32) ---
    out = _layernorm(out1 + ffn, ln2w_ref[...], ln2b_ref[...], 1e-6)
    out_ref[...] = out.reshape(BB, L, d_model)


def prepare_params(params, *, n_head, d_k, d_v):
    """One-time parameter prep (hoisted out of the per-call path).

    Fuses Q|K|V weights/biases, folds the 1/sqrt(d_k) temperature into the
    Q columns, and casts matmul weights to bf16.  Call once, reuse forever.
    """
    inv_temp = 1.0 / (d_k ** 0.5)
    wq = params["wq"] * inv_temp
    bq = params["bq"] * inv_temp
    return {
        "wqkv": jnp.concatenate([wq, params["wk"], params["wv"]],
                                axis=1).astype(jnp.bfloat16),
        "bqkv": jnp.concatenate([bq, params["bk"], params["bv"]], axis=1),
        "wo": params["wo"].astype(jnp.bfloat16),
        "bo": params["bo"],
        "ln1_w": params["ln1_w"], "ln1_b": params["ln1_b"],
        "w1": params["w1"].astype(jnp.bfloat16),
        "b1": params["b1"].astype(jnp.bfloat16),
        "w2": params["w2"].astype(jnp.bfloat16),
        "b2": params["b2"],
        "ln2_w": params["ln2_w"], "ln2_b": params["ln2_b"],
    }


def encoder_layer(x, prep, *, n_head, d_k, d_v):
    B, L, d_model = x.shape
    d_inner = prep["w1"].shape[1]

    # Pack whole sequences into row blocks so every MXU matmul sees
    # M = bb*L rows (target >= 256).  cdiv grid + zero-padded tail, so bb
    # never collapses to 1 for batch sizes without a convenient divisor.
    target_rows = 256
    bb = max(1, min(B, target_rows // max(L, 1)))
    if bb < B and bb >= 8:
        bb = (bb // 8) * 8     # keep attn-output block sublane-aligned
    num_blocks = pl.cdiv(B, bb)
    B_pad = num_blocks * bb
    if B_pad != B:
        x = jnp.pad(x, ((0, B_pad - B), (0, 0), (0, 0)))
    # NOTE(v7x): for large B, num_blocks >= 2 falls out naturally and the
    # "parallel" grid axis shards steps across both TensorCores.
    grid = (num_blocks,)

    kernel = functools.partial(encoder_layer_kernel,
                               n_head=n_head, d_k=d_k, d_v=d_v)

    def const(shape):
        # whole-array block, same for every grid step
        n = len(shape)
        return pl.BlockSpec(shape, lambda i, n=n: (0,) * n)

    attn_cols = n_head * L * L   # = 128 at the module's default shape
    in_specs = [
        pl.BlockSpec((bb, L, d_model), lambda i: (i, 0, 0)),               # x
        const((d_model, 3 * n_head * d_k)), const((1, 3 * n_head * d_k)),  # wqkv, bqkv
        const((n_head * d_v, d_model)), const((1, d_model)),               # wo, bo
        const((1, d_model)), const((1, d_model)),                          # ln1 w, b
        const((d_model, d_inner)), const((1, d_inner)),                    # ffn w1, b1
        const((d_inner, d_model)), const((1, d_model)),                    # ffn w2, b2
        const((1, d_model)), const((1, d_model)),                          # ln2 w, b
    ]
    out_specs = [
        pl.BlockSpec((bb, L, d_model), lambda i: (i, 0, 0)),
        pl.BlockSpec((bb, attn_cols), lambda i: (i, 0)),   # lane-dense attn
    ]
    out_shape = (
        jax.ShapeDtypeStruct((B_pad, L, d_model), jnp.float32),
        jax.ShapeDtypeStruct((B_pad, attn_cols), jnp.float32),
    )

    args = (
        x,
        prep["wqkv"], prep["bqkv"], prep["wo"], prep["bo"],
        prep["ln1_w"], prep["ln1_b"],
        prep["w1"], prep["b1"], prep["w2"], prep["b2"],
        prep["ln2_w"], prep["ln2_b"],
    )

    out, attn_packed = pl.pallas_call(
        kernel,
        out_shape=out_shape,
        grid_spec=pltpu.PrefetchScalarGridSpec(
            num_scalar_prefetch=0,
            grid=grid,
            in_specs=in_specs,
            out_specs=out_specs,
        ),
        compiler_params=pltpu.CompilerParams(
            dimension_semantics=("parallel",),
        ),
    )(*args)

    if B_pad != B:
        out = out[:B]
        attn_packed = attn_packed[:B]
    # contiguous row-major reshape in the wrapper (free): [b, h*L*L + q*L + k]
    attn = attn_packed.reshape(B, n_head, L, L)
    return out, attn


# ------------------------- pure-JAX reference (f32) -------------------------
def encoder_layer_ref(x, params, *, n_head, d_k, d_v):
    B, L, d_model = x.shape
    qp = x @ params["wq"] + params["bq"]
    kp = x @ params["wk"] + params["bk"]
    vp = x @ params["wv"] + params["bv"]
    q = qp.reshape(B, L, n_head, d_k).transpose(0, 2, 1, 3)
    k = kp.reshape(B, L, n_head, d_k).transpose(0, 2, 1, 3)
    v = vp.reshape(B, L, n_head, d_v).transpose(0, 2, 1, 3)
    scores = jnp.einsum("bhqd,bhkd->bhqk", q / (d_k ** 0.5), k)
    attn = jax.nn.softmax(scores, axis=-1)
    r = jnp.einsum("bhqk,bhkd->bhqd", attn, v)
    r = r.transpose(0, 2, 1, 3).reshape(B, L, n_head * d_v)
    att_out = r @ params["wo"] + params["bo"]

    def ln(x, w, b):
        mu = jnp.mean(x, axis=-1, keepdims=True)
        var = jnp.mean((x - mu) ** 2, axis=-1, keepdims=True)
        return (x - mu) / jnp.sqrt(var + 1e-6) * w + b

    out1 = ln(x + att_out, params["ln1_w"], params["ln1_b"])
    hid = jax.nn.relu(out1 @ params["w1"] + params["b1"])
    ffn = hid @ params["w2"] + params["b2"]
    out = ln(out1 + ffn, params["ln2_w"], params["ln2_b"])
    return out, attn


# ------------------------- parameter init -------------------------
def init_params(key, d_model, d_inner, n_head, d_k, d_v):
    ks = jax.random.split(key, 6)
    scale = 0.05  # deterministic small random init (stand-in for orthogonal)
    p = {
        "wq": scale * jax.random.normal(ks[0], (d_model, n_head * d_k), jnp.float32),
        "bq": jnp.zeros((1, n_head * d_k), jnp.float32),
        "wk": scale * jax.random.normal(ks[1], (d_model, n_head * d_k), jnp.float32),
        "bk": jnp.zeros((1, n_head * d_k), jnp.float32),
        "wv": scale * jax.random.normal(ks[2], (d_model, n_head * d_v), jnp.float32),
        "bv": jnp.zeros((1, n_head * d_v), jnp.float32),
        "wo": scale * jax.random.normal(ks[3], (n_head * d_v, d_model), jnp.float32),
        "bo": jnp.zeros((1, d_model), jnp.float32),
        "ln1_w": jnp.ones((1, d_model), jnp.float32),
        "ln1_b": jnp.zeros((1, d_model), jnp.float32),
        "w1": scale * jax.random.normal(ks[4], (d_model, d_inner), jnp.float32),
        "b1": jnp.zeros((1, d_inner), jnp.float32),
        "w2": scale * jax.random.normal(ks[5], (d_inner, d_model), jnp.float32),
        "b2": jnp.zeros((1, d_model), jnp.float32),
        "ln2_w": jnp.ones((1, d_model), jnp.float32),
        "ln2_b": jnp.zeros((1, d_model), jnp.float32),
    }
    return p


if __name__ == "__main__":
    # module defaults: d_model=256, d_inner=1024, n_head=2, d_k=d_v=128
    B, L = 2, 8
    d_model, d_inner, n_head, d_k, d_v = 256, 1024, 2, 128, 128

    key = jax.random.PRNGKey(0)
    kx, kp = jax.random.split(key)
    x = jax.random.normal(kx, (B, L, d_model), jnp.float32)
    params = init_params(kp, d_model, d_inner, n_head, d_k, d_v)

    # one-time weight prep (hoisted out of the forward path)
    prep = prepare_params(params, n_head=n_head, d_k=d_k, d_v=d_v)

    out, attn = encoder_layer(x, prep, n_head=n_head, d_k=d_k, d_v=d_v)
    out = jax.block_until_ready(out)
    attn = jax.block_until_ready(attn)

    out_ref, attn_ref = encoder_layer_ref(x, params, n_head=n_head, d_k=d_k, d_v=d_v)
    assert out.shape == (B, L, d_model) and attn.shape == (B, n_head, L, L)
    # bf16 matmuls in the kernel vs. f32 reference: tolerances loosened.
    assert jnp.allclose(out, out_ref, atol=3e-2, rtol=3e-2)
    assert jnp.allclose(attn, attn_ref, atol=2e-2, rtol=2e-2)

    print("KERNEL_OK")
</pallas_src>

<mosaic_0001>
module attributes {stable_mosaic.version = 11 : i64} {
  func.func @encoder_layer_kernel(%arg0: i32, %arg1: memref<2x8x256xf32, #tpu.memory_space<vmem>>, %arg2: memref<256x768xbf16, #tpu.memory_space<vmem>>, %arg3: memref<1x768xf32, #tpu.memory_space<vmem>>, %arg4: memref<256x256xbf16, #tpu.memory_space<vmem>>, %arg5: memref<1x256xf32, #tpu.memory_space<vmem>>, %arg6: memref<1x256xf32, #tpu.memory_space<vmem>>, %arg7: memref<1x256xf32, #tpu.memory_space<vmem>>, %arg8: memref<256x1024xbf16, #tpu.memory_space<vmem>>, %arg9: memref<1x1024xbf16, #tpu.memory_space<vmem>>, %arg10: memref<1024x256xbf16, #tpu.memory_space<vmem>>, %arg11: memref<1x256xf32, #tpu.memory_space<vmem>>, %arg12: memref<1x256xf32, #tpu.memory_space<vmem>>, %arg13: memref<1x256xf32, #tpu.memory_space<vmem>>, %arg14: memref<2x8x256xf32, #tpu.memory_space<vmem>>, %arg15: memref<2x128xf32, #tpu.memory_space<vmem>>) attributes {dimension_semantics = [#tpu.dimension_semantics<parallel>], iteration_bounds = array<i64: 1>, scalar_prefetch = 0 : i64, scratch_operands = 0 : i64, tpu.core_type = #tpu.core_type<tc>, window_params = [{transform_indices = @transform_0, window_bounds = array<i64: 2, 8, 256>}, {pipeline_mode = #tpu.pipeline_mode<synchronous>, transform_indices = @transform_1, window_bounds = array<i64: 256, 768>}, {pipeline_mode = #tpu.pipeline_mode<synchronous>, transform_indices = @transform_2, window_bounds = array<i64: 1, 768>}, {pipeline_mode = #tpu.pipeline_mode<synchronous>, transform_indices = @transform_3, window_bounds = array<i64: 256, 256>}, {pipeline_mode = #tpu.pipeline_mode<synchronous>, transform_indices = @transform_4, window_bounds = array<i64: 1, 256>}, {pipeline_mode = #tpu.pipeline_mode<synchronous>, transform_indices = @transform_5, window_bounds = array<i64: 1, 256>}, {pipeline_mode = #tpu.pipeline_mode<synchronous>, transform_indices = @transform_6, window_bounds = array<i64: 1, 256>}, {pipeline_mode = #tpu.pipeline_mode<synchronous>, transform_indices = @transform_7, window_bounds = array<i64: 256, 1024>}, {pipeline_mode = #tpu.pipeline_mode<synchronous>, transform_indices = @transform_8, window_bounds = array<i64: 1, 1024>}, {pipeline_mode = #tpu.pipeline_mode<synchronous>, transform_indices = @transform_9, window_bounds = array<i64: 1024, 256>}, {pipeline_mode = #tpu.pipeline_mode<synchronous>, transform_indices = @transform_10, window_bounds = array<i64: 1, 256>}, {pipeline_mode = #tpu.pipeline_mode<synchronous>, transform_indices = @transform_11, window_bounds = array<i64: 1, 256>}, {pipeline_mode = #tpu.pipeline_mode<synchronous>, transform_indices = @transform_12, window_bounds = array<i64: 1, 256>}, {transform_indices = @transform_13, window_bounds = array<i64: 2, 8, 256>}, {transform_indices = @transform_14, window_bounds = array<i64: 2, 128>}]} {
    %c0 = arith.constant 0 : index
    %c0_0 = arith.constant 0 : index
    %c0_1 = arith.constant 0 : index
    %0 = vector.load %arg1[%c0, %c0_0, %c0_1] : memref<2x8x256xf32, #tpu.memory_space<vmem>>, vector<2x8x256xf32>
    %1 = vector.shape_cast %0 : vector<2x8x256xf32> to vector<16x256xf32>
    %2 = arith.truncf %1 : vector<16x256xf32> to vector<16x256xbf16>
    %c0_2 = arith.constant 0 : index
    %c0_3 = arith.constant 0 : index
    %3 = vector.load %arg2[%c0_2, %c0_3] : memref<256x768xbf16, #tpu.memory_space<vmem>>, vector<256x768xbf16>
    %cst = arith.constant dense<0.000000e+00> : vector<16x768xf32>
    %4 = tpu.matmul %2, %3, %cst {dimension_numbers = #tpu.dot_dimension_numbers<[1], [0], [0], [1], [0, 0, 1, 1], [], []>} : vector<16x256xbf16>, vector<256x768xbf16>, vector<16x768xf32> -> vector<16x768xf32>
    %c0_4 = arith.constant 0 : index
    %c0_5 = arith.constant 0 : index
    %5 = vector.load %arg3[%c0_4, %c0_5] : memref<1x768xf32, #tpu.memory_space<vmem>>, vector<1x768xf32>
    %6 = vector.broadcast %5 : vector<1x768xf32> to vector<16x768xf32>
    %7 = arith.addf %4, %6 : vector<16x768xf32>
    %8 = vector.extract_strided_slice %7 {offsets = [0, 0], sizes = [16, 128], strides = [1, 1]} : vector<16x768xf32> to vector<16x128xf32>
    %9 = vector.shape_cast %8 : vector<16x128xf32> to vector<2x8x128xf32>
    %10 = arith.truncf %9 : vector<2x8x128xf32> to vector<2x8x128xbf16>
    %11 = vector.extract_strided_slice %7 {offsets = [0, 256], sizes = [16, 128], strides = [1, 1]} : vector<16x768xf32> to vector<16x128xf32>
    %12 = vector.shape_cast %11 : vector<16x128xf32> to vector<2x8x128xf32>
    %13 = arith.truncf %12 : vector<2x8x128xf32> to vector<2x8x128xbf16>
    %14 = vector.extract_strided_slice %7 {offsets = [0, 512], sizes = [16, 128], strides = [1, 1]} : vector<16x768xf32> to vector<16x128xf32>
    %15 = vector.shape_cast %14 : vector<16x128xf32> to vector<2x8x128xf32>
    %16 = arith.truncf %15 : vector<2x8x128xf32> to vector<2x8x128xbf16>
    "tpu.trace_start"() <{level = 10 : i32, message = "bqd,bkd->bqk"}> : () -> ()
    %cst_6 = arith.constant dense<0.000000e+00> : vector<2x8x8xf32>
    %17 = tpu.matmul %10, %13, %cst_6 {dimension_numbers = #tpu.dot_dimension_numbers<[2], [2], [1], [1], [0, 0, 0, 1, 1, 1], [0], [0]>} : vector<2x8x128xbf16>, vector<2x8x128xbf16>, vector<2x8x8xf32> -> vector<2x8x8xf32>
    "tpu.trace_stop"() : () -> ()
    %cst_7 = arith.constant dense<0xFF800000> : vector<2x8xf32>
    %18 = vector.multi_reduction <maximumf>, %17, %cst_7 [2] : vector<2x8x8xf32> to vector<2x8xf32>
    %19 = vector.shape_cast %18 : vector<2x8xf32> to vector<2x8x1xf32>
    %20 = vector.broadcast %19 : vector<2x8x1xf32> to vector<2x8x8xf32>
    %21 = arith.subf %17, %20 : vector<2x8x8xf32>
    %22 = math.exp %21 : vector<2x8x8xf32>
    %cst_8 = arith.constant dense<0.000000e+00> : vector<2x8xf32>
    %23 = vector.multi_reduction <add>, %22, %cst_8 [2] : vector<2x8x8xf32> to vector<2x8xf32>
    %24 = vector.shape_cast %23 : vector<2x8xf32> to vector<2x8x1xf32>
    %25 = tpu.reciprocal %24 : vector<2x8x1xf32> -> vector<2x8x1xf32>
    %26 = vector.broadcast %25 : vector<2x8x1xf32> to vector<2x8x8xf32>
    %27 = arith.mulf %22, %26 : vector<2x8x8xf32>
    %28 = vector.shape_cast %27 : vector<2x8x8xf32> to vector<2x64xf32>
    %29 = arith.truncf %27 : vector<2x8x8xf32> to vector<2x8x8xbf16>
    "tpu.trace_start"() <{level = 10 : i32, message = "bqk,bkd->bqd"}> : () -> ()
    %cst_9 = arith.constant dense<0.000000e+00> : vector<2x8x128xf32>
    %30 = tpu.matmul %29, %16, %cst_9 {dimension_numbers = #tpu.dot_dimension_numbers<[2], [1], [1], [2], [0, 0, 0, 1, 1, 2], [0], [0]>} : vector<2x8x8xbf16>, vector<2x8x128xbf16>, vector<2x8x128xf32> -> vector<2x8x128xf32>
    "tpu.trace_stop"() : () -> ()
    %31 = vector.shape_cast %30 : vector<2x8x128xf32> to vector<16x128xf32>
    %32 = vector.extract_strided_slice %7 {offsets = [0, 128], sizes = [16, 128], strides = [1, 1]} : vector<16x768xf32> to vector<16x128xf32>
    %33 = vector.shape_cast %32 : vector<16x128xf32> to vector<2x8x128xf32>
    %34 = arith.truncf %33 : vector<2x8x128xf32> to vector<2x8x128xbf16>
    %35 = vector.extract_strided_slice %7 {offsets = [0, 384], sizes = [16, 128], strides = [1, 1]} : vector<16x768xf32> to vector<16x128xf32>
    %36 = vector.shape_cast %35 : vector<16x128xf32> to vector<2x8x128xf32>
    %37 = arith.truncf %36 : vector<2x8x128xf32> to vector<2x8x128xbf16>
    %38 = vector.extract_strided_slice %7 {offsets = [0, 640], sizes = [16, 128], strides = [1, 1]} : vector<16x768xf32> to vector<16x128xf32>
    %39 = vector.shape_cast %38 : vector<16x128xf32> to vector<2x8x128xf32>
    %40 = arith.truncf %39 : vector<2x8x128xf32> to vector<2x8x128xbf16>
    "tpu.trace_start"() <{level = 10 : i32, message = "bqd,bkd->bqk"}> : () -> ()
    %cst_10 = arith.constant dense<0.000000e+00> : vector<2x8x8xf32>
    %41 = tpu.matmul %34, %37, %cst_10 {dimension_numbers = #tpu.dot_dimension_numbers<[2], [2], [1], [1], [0, 0, 0, 1, 1, 1], [0], [0]>} : vector<2x8x128xbf16>, vector<2x8x128xbf16>, vector<2x8x8xf32> -> vector<2x8x8xf32>
    "tpu.trace_stop"() : () -> ()
    %cst_11 = arith.constant dense<0xFF800000> : vector<2x8xf32>
    %42 = vector.multi_reduction <maximumf>, %41, %cst_11 [2] : vector<2x8x8xf32> to vector<2x8xf32>
    %43 = vector.shape_cast %42 : vector<2x8xf32> to vector<2x8x1xf32>
    %44 = vector.broadcast %43 : vector<2x8x1xf32> to vector<2x8x8xf32>
    %45 = arith.subf %41, %44 : vector<2x8x8xf32>
    %46 = math.exp %45 : vector<2x8x8xf32>
    %cst_12 = arith.constant dense<0.000000e+00> : vector<2x8xf32>
    %47 = vector.multi_reduction <add>, %46, %cst_12 [2] : vector<2x8x8xf32> to vector<2x8xf32>
    %48 = vector.shape_cast %47 : vector<2x8xf32> to vector<2x8x1xf32>
    %49 = tpu.reciprocal %48 : vector<2x8x1xf32> -> vector<2x8x1xf32>
    %50 = vector.broadcast %49 : vector<2x8x1xf32> to vector<2x8x8xf32>
    %51 = arith.mulf %46, %50 : vector<2x8x8xf32>
    %52 = vector.shape_cast %51 : vector<2x8x8xf32> to vector<2x64xf32>
    %53 = arith.truncf %51 : vector<2x8x8xf32> to vector<2x8x8xbf16>
    "tpu.trace_start"() <{level = 10 : i32, message = "bqk,bkd->bqd"}> : () -> ()
    %cst_13 = arith.constant dense<0.000000e+00> : vector<2x8x128xf32>
    %54 = tpu.matmul %53, %40, %cst_13 {dimension_numbers = #tpu.dot_dimension_numbers<[2], [1], [1], [2], [0, 0, 0, 1, 1, 2], [0], [0]>} : vector<2x8x8xbf16>, vector<2x8x128xbf16>, vector<2x8x128xf32> -> vector<2x8x128xf32>
    "tpu.trace_stop"() : () -> ()
    %55 = vector.shape_cast %54 : vector<2x8x128xf32> to vector<16x128xf32>
    %56 = tpu.concatenate %28, %52 in 1 : vector<2x64xf32>, vector<2x64xf32> -> vector<2x128xf32>
    %c0_14 = arith.constant 0 : index
    %c0_15 = arith.constant 0 : index
    %57 = vector.load %arg15[%c0_14, %c0_15] : memref<2x128xf32, #tpu.memory_space<vmem>>, vector<2x128xf32>
    tpu.vector_store %arg15[%c0_14, %c0_15], %56 {strides = array<i32>} : memref<2x128xf32, #tpu.memory_space<vmem>>, vector<2x128xf32>,
    %58 = tpu.concatenate %31, %55 in 1 : vector<16x128xf32>, vector<16x128xf32> -> vector<16x256xf32>
    %59 = arith.truncf %58 : vector<16x256xf32> to vector<16x256xbf16>
    %c0_16 = arith.constant 0 : index
    %c0_17 = arith.constant 0 : index
    %60 = vector.load %arg4[%c0_16, %c0_17] : memref<256x256xbf16, #tpu.memory_space<vmem>>, vector<256x256xbf16>
    %cst_18 = arith.constant dense<0.000000e+00> : vector<16x256xf32>
    %61 = tpu.matmul %59, %60, %cst_18 {dimension_numbers = #tpu.dot_dimension_numbers<[1], [0], [0], [1], [0, 0, 1, 1], [], []>} : vector<16x256xbf16>, vector<256x256xbf16>, vector<16x256xf32> -> vector<16x256xf32>
    %c0_19 = arith.constant 0 : index
    %c0_20 = arith.constant 0 : index
    %62 = vector.load %arg5[%c0_19, %c0_20] : memref<1x256xf32, #tpu.memory_space<vmem>>, vector<1x256xf32>
    %63 = vector.broadcast %62 : vector<1x256xf32> to vector<16x256xf32>
    %64 = arith.addf %61, %63 : vector<16x256xf32>
    %65 = arith.addf %1, %64 : vector<16x256xf32>
    %c0_21 = arith.constant 0 : index
    %c0_22 = arith.constant 0 : index
    %66 = vector.load %arg6[%c0_21, %c0_22] : memref<1x256xf32, #tpu.memory_space<vmem>>, vector<1x256xf32>
    %c0_23 = arith.constant 0 : index
    %c0_24 = arith.constant 0 : index
    %67 = vector.load %arg7[%c0_23, %c0_24] : memref<1x256xf32, #tpu.memory_space<vmem>>, vector<1x256xf32>
    %cst_25 = arith.constant dense<0.000000e+00> : vector<16xf32>
    %68 = vector.multi_reduction <add>, %65, %cst_25 [1] : vector<16x256xf32> to vector<16xf32>
    %69 = vector.shape_cast %68 : vector<16xf32> to vector<16x1xf32>
    %cst_26 = arith.constant 2.560000e+02 : f32
    %70 = vector.broadcast %cst_26 : f32 to vector<16x1xf32>
    %71 = arith.divf %69, %70 : vector<16x1xf32>
    %72 = vector.broadcast %71 : vector<16x1xf32> to vector<16x256xf32>
    %73 = arith.subf %65, %72 : vector<16x256xf32>
    %74 = arith.mulf %73, %73 : vector<16x256xf32>
    %cst_27 = arith.constant dense<0.000000e+00> : vector<16xf32>
    %75 = vector.multi_reduction <add>, %74, %cst_27 [1] : vector<16x256xf32> to vector<16xf32>
    %76 = vector.shape_cast %75 : vector<16xf32> to vector<16x1xf32>
    %cst_28 = arith.constant 2.560000e+02 : f32
    %77 = vector.broadcast %cst_28 : f32 to vector<16x1xf32>
    %78 = arith.divf %76, %77 : vector<16x1xf32>
    %cst_29 = arith.constant 9.99999997E-7 : f32
    %79 = vector.broadcast %cst_29 : f32 to vector<16x1xf32>
    %80 = arith.addf %78, %79 : vector<16x1xf32>
    %81 = math.rsqrt %80 : vector<16x1xf32>
    %82 = vector.broadcast %81 : vector<16x1xf32> to vector<16x256xf32>
    %83 = arith.mulf %73, %82 : vector<16x256xf32>
    %84 = vector.broadcast %66 : vector<1x256xf32> to vector<16x256xf32>
    %85 = arith.mulf %83, %84 : vector<16x256xf32>
    %86 = vector.broadcast %67 : vector<1x256xf32> to vector<16x256xf32>
    %87 = arith.addf %85, %86 : vector<16x256xf32>
    %88 = arith.truncf %87 : vector<16x256xf32> to vector<16x256xbf16>
    %c0_30 = arith.constant 0 : index
    %c0_31 = arith.constant 0 : index
    %89 = vector.load %arg8[%c0_30, %c0_31] : memref<256x1024xbf16, #tpu.memory_space<vmem>>, vector<256x1024xbf16>
    %cst_32 = arith.constant dense<0.000000e+00> : vector<16x1024xf32>
    %90 = tpu.matmul %88, %89, %cst_32 {dimension_numbers = #tpu.dot_dimension_numbers<[1], [0], [0], [1], [0, 0, 1, 1], [], []>} : vector<16x256xbf16>, vector<256x1024xbf16>, vector<16x1024xf32> -> vector<16x1024xf32>
    %91 = arith.truncf %90 : vector<16x1024xf32> to vector<16x1024xbf16>
    %c0_33 = arith.constant 0 : index
    %c0_34 = arith.constant 0 : index
    %92 = vector.load %arg9[%c0_33, %c0_34] : memref<1x1024xbf16, #tpu.memory_space<vmem>>, vector<1x1024xbf16>
    %93 = vector.broadcast %92 : vector<1x1024xbf16> to vector<16x1024xbf16>
    %94 = arith.addf %91, %93 : vector<16x1024xbf16>
    %cst_35 = arith.constant 0.000000e+00 : bf16
    %95 = vector.broadcast %cst_35 : bf16 to vector<16x1024xbf16>
    %96 = arith.maximumf %94, %95 : vector<16x1024xbf16>
    %c0_36 = arith.constant 0 : index
    %c0_37 = arith.constant 0 : index
    %97 = vector.load %arg10[%c0_36, %c0_37] : memref<1024x256xbf16, #tpu.memory_space<vmem>>, vector<1024x256xbf16>
    %cst_38 = arith.constant dense<0.000000e+00> : vector<16x256xf32>
    %98 = tpu.matmul %96, %97, %cst_38 {dimension_numbers = #tpu.dot_dimension_numbers<[1], [0], [0], [1], [0, 0, 1, 1], [], []>} : vector<16x1024xbf16>, vector<1024x256xbf16>, vector<16x256xf32> -> vector<16x256xf32>
    %c0_39 = arith.constant 0 : index
    %c0_40 = arith.constant 0 : index
    %99 = vector.load %arg11[%c0_39, %c0_40] : memref<1x256xf32, #tpu.memory_space<vmem>>, vector<1x256xf32>
    %100 = vector.broadcast %99 : vector<1x256xf32> to vector<16x256xf32>
    %101 = arith.addf %98, %100 : vector<16x256xf32>
    %102 = arith.addf %87, %101 : vector<16x256xf32>
    %c0_41 = arith.constant 0 : index
    %c0_42 = arith.constant 0 : index
    %103 = vector.load %arg12[%c0_41, %c0_42] : memref<1x256xf32, #tpu.memory_space<vmem>>, vector<1x256xf32>
    %c0_43 = arith.constant 0 : index
    %c0_44 = arith.constant 0 : index
    %104 = vector.load %arg13[%c0_43, %c0_44] : memref<1x256xf32, #tpu.memory_space<vmem>>, vector<1x256xf32>
    %cst_45 = arith.constant dense<0.000000e+00> : vector<16xf32>
    %105 = vector.multi_reduction <add>, %102, %cst_45 [1] : vector<16x256xf32> to vector<16xf32>
    %106 = vector.shape_cast %105 : vector<16xf32> to vector<16x1xf32>
    %cst_46 = arith.constant 2.560000e+02 : f32
    %107 = vector.broadcast %cst_46 : f32 to vector<16x1xf32>
    %108 = arith.divf %106, %107 : vector<16x1xf32>
    %109 = vector.broadcast %108 : vector<16x1xf32> to vector<16x256xf32>
    %110 = arith.subf %102, %109 : vector<16x256xf32>
    %111 = arith.mulf %110, %110 : vector<16x256xf32>
    %cst_47 = arith.constant dense<0.000000e+00> : vector<16xf32>
    %112 = vector.multi_reduction <add>, %111, %cst_47 [1] : vector<16x256xf32> to vector<16xf32>
    %113 = vector.shape_cast %112 : vector<16xf32> to vector<16x1xf32>
    %cst_48 = arith.constant 2.560000e+02 : f32
    %114 = vector.broadcast %cst_48 : f32 to vector<16x1xf32>
    %115 = arith.divf %113, %114 : vector<16x1xf32>
    %cst_49 = arith.constant 9.99999997E-7 : f32
    %116 = vector.broadcast %cst_49 : f32 to vector<16x1xf32>
    %117 = arith.addf %115, %116 : vector<16x1xf32>
    %118 = math.rsqrt %117 : vector<16x1xf32>
    %119 = vector.broadcast %118 : vector<16x1xf32> to vector<16x256xf32>
    %120 = arith.mulf %110, %119 : vector<16x256xf32>
    %121 = vector.broadcast %103 : vector<1x256xf32> to vector<16x256xf32>
    %122 = arith.mulf %120, %121 : vector<16x256xf32>
    %123 = vector.broadcast %104 : vector<1x256xf32> to vector<16x256xf32>
    %124 = arith.addf %122, %123 : vector<16x256xf32>
    %125 = vector.shape_cast %124 : vector<16x256xf32> to vector<2x8x256xf32>
    %c0_50 = arith.constant 0 : index
    %c0_51 = arith.constant 0 : index
    %c0_52 = arith.constant 0 : index
    %126 = vector.load %arg14[%c0_50, %c0_51, %c0_52] : memref<2x8x256xf32, #tpu.memory_space<vmem>>, vector<2x8x256xf32>
    tpu.vector_store %arg14[%c0_50, %c0_51, %c0_52], %125 {strides = array<i32>} : memref<2x8x256xf32, #tpu.memory_space<vmem>>, vector<2x8x256xf32>,
    return
  }
  func.func @transform_0(%arg0: i32) -> (i32, i32, i32) {
    %c0_i32 = arith.constant 0 : i32
    %c0_i32_0 = arith.constant 0 : i32
    %c0_i32_1 = arith.constant 0 : i32
    return %arg0, %c0_i32, %c0_i32_0 : i32, i32, i32
  }
  func.func @transform_1(%arg0: i32) -> (i32, i32) {
    %c0_i32 = arith.constant 0 : i32
    %c0_i32_0 = arith.constant 0 : i32
    %c0_i32_1 = arith.constant 0 : i32
    return %c0_i32, %c0_i32_0 : i32, i32
  }
  func.func @transform_2(%arg0: i32) -> (i32, i32) {
    %c0_i32 = arith.constant 0 : i32
    %c0_i32_0 = arith.constant 0 : i32
    %c0_i32_1 = arith.constant 0 : i32
    return %c0_i32, %c0_i32_0 : i32, i32
  }
  func.func @transform_3(%arg0: i32) -> (i32, i32) {
    %c0_i32 = arith.constant 0 : i32
    %c0_i32_0 = arith.constant 0 : i32
    %c0_i32_1 = arith.constant 0 : i32
    return %c0_i32, %c0_i32_0 : i32, i32
  }
  func.func @transform_4(%arg0: i32) -> (i32, i32) {
    %c0_i32 = arith.constant 0 : i32
    %c0_i32_0 = arith.constant 0 : i32
    %c0_i32_1 = arith.constant 0 : i32
    return %c0_i32, %c0_i32_0 : i32, i32
  }
  func.func @transform_5(%arg0: i32) -> (i32, i32) {
    %c0_i32 = arith.constant 0 : i32
    %c0_i32_0 = arith.constant 0 : i32
    %c0_i32_1 = arith.constant 0 : i32
    return %c0_i32, %c0_i32_0 : i32, i32
  }
  func.func @transform_6(%arg0: i32) -> (i32, i32) {
    %c0_i32 = arith.constant 0 : i32
    %c0_i32_0 = arith.constant 0 : i32
    %c0_i32_1 = arith.constant 0 : i32
    return %c0_i32, %c0_i32_0 : i32, i32
  }
  func.func @transform_7(%arg0: i32) -> (i32, i32) {
    %c0_i32 = arith.constant 0 : i32
    %c0_i32_0 = arith.constant 0 : i32
    %c0_i32_1 = arith.constant 0 : i32
    return %c0_i32, %c0_i32_0 : i32, i32
  }
  func.func @transform_8(%arg0: i32) -> (i32, i32) {
    %c0_i32 = arith.constant 0 : i32
    %c0_i32_0 = arith.constant 0 : i32
    %c0_i32_1 = arith.constant 0 : i32
    return %c0_i32, %c0_i32_0 : i32, i32
  }
  func.func @transform_9(%arg0: i32) -> (i32, i32) {
    %c0_i32 = arith.constant 0 : i32
    %c0_i32_0 = arith.constant 0 : i32
    %c0_i32_1 = arith.constant 0 : i32
    return %c0_i32, %c0_i32_0 : i32, i32
  }
  func.func @transform_10(%arg0: i32) -> (i32, i32) {
    %c0_i32 = arith.constant 0 : i32
    %c0_i32_0 = arith.constant 0 : i32
    %c0_i32_1 = arith.constant 0 : i32
    return %c0_i32, %c0_i32_0 : i32, i32
  }
  func.func @transform_11(%arg0: i32) -> (i32, i32) {
    %c0_i32 = arith.constant 0 : i32
    %c0_i32_0 = arith.constant 0 : i32
    %c0_i32_1 = arith.constant 0 : i32
    return %c0_i32, %c0_i32_0 : i32, i32
  }
  func.func @transform_12(%arg0: i32) -> (i32, i32) {
    %c0_i32 = arith.constant 0 : i32
    %c0_i32_0 = arith.constant 0 : i32
    %c0_i32_1 = arith.constant 0 : i32
    return %c0_i32, %c0_i32_0 : i32, i32
  }
  func.func @transform_13(%arg0: i32) -> (i32, i32, i32) {
    %c0_i32 = arith.constant 0 : i32
    %c0_i32_0 = arith.constant 0 : i32
    %c0_i32_1 = arith.constant 0 : i32
    return %arg0, %c0_i32, %c0_i32_0 : i32, i32, i32
  }
  func.func @transform_14(%arg0: i32) -> (i32, i32) {
    %c0_i32 = arith.constant 0 : i32
    %c0_i32_0 = arith.constant 0 : i32
    return %arg0, %c0_i32 : i32, i32
  }
}

</mosaic_0001>

<bundles_post_ra>
// kernel: tpu_custom_call.1
= control target key start
LH: loop header
LB: loop body
LE: loop exit
PB: predicated region body
PF: predicated region fallthrough
CT: control target
= control target key end

     0   :  { %20 = vsyncpa [#allocation3], 0  ;;  %s5582_s0 = inlined_call_operand.hbm [shape: f32[2,8,256], index: 0, kind: input, shape index: {}]   ;;  %s5583_s1 = inlined_call_operand.hbm [shape: bf16[256,768], index: 1, kind: input, shape index: {}]   ;;  %s5584_s2 = inlined_call_operand.vmem [shape: f32[1,768], index: 2, kind: input, shape index: {}]   ;;  %s5585_s3 = inlined_call_operand.hbm [shape: bf16[256,256], index: 3, kind: input, shape index: {}]   ;;  %s5586_s4 = inlined_call_operand.hbm [shape: f32[1,256], index: 4, kind: input, shape index: {}]   ;;  %s5587_s5 = inlined_call_operand.vmem [shape: f32[1,256], index: 5, kind: input, shape index: {}]   ;;  %s5588_s6 = inlined_call_operand.vmem [shape: f32[1,256], index: 6, kind: input, shape index: {}]   ;;  %s5589_s7 = inlined_call_operand.hbm [shape: bf16[256,1024], index: 7, kind: input, shape index: {}]   ;;  %s5590_s8 = inlined_call_operand.vmem [shape: bf16[1,1024], index: 8, kind: input, shape index: {}]   ;;  %s5591_s9 = inlined_call_operand.hbm [shape: bf16[1024,256], index: 9, kind: input, shape index: {}]   ;;  %s5592_s10 = inlined_call_operand.vmem [shape: f32[1,256], index: 10, kind: input, shape index: {}]   ;;  %s5593_s11 = inlined_call_operand.vmem [shape: f32[1,256], index: 11, kind: input, shape index: {}]   ;;  %s5594_s12 = inlined_call_operand.vmem [shape: f32[1,256], index: 12, kind: input, shape index: {}]   ;;  %s5595_s13 = inlined_call_operand.hbm [shape: f32[2,8,256], index: 13, kind: output, shape index: {0}]   ;;  %s5596_s14 = inlined_call_operand.hbm [shape: f32[2,128], index: 14, kind: output, shape index: {1}]  }
   0x1   :  { %21 = vsyncpa [#allocation6], 0 }
   0x2   :  { %22 = vsyncpa [#allocation9], 0 }
   0x3   :  { %23 = vsyncpa [#allocation12], 0 }
   0x4   :  { %24 = vsyncpa [#allocation4], 0 }
   0x5   :  { %25 = vsyncpa [#allocation15], 0  ;;  %s5037_s29 = smov [#allocation5]   ;;  %s4849_s17 = scalar_lea.hbm %s5583_s1, 12288 }
   0x6   :  { %s43_s30 = sshll.u32 %s5037_s29, 4  ;;  %p4850_p0 = scmp.ne.s32.totalorder %s5583_s1, %s4849_s17  ;;  %s44_s30 = int_to_ptr.vmem [resolvable:$true] %s43_s30 }
   0x7   :  { %p4853_p1 = scmp.lt.u32.totalorder %s4849_s17, %s5583_s1 }
   0x9   :  { %p4855_p2 = pnand %p4853_p1, %p4850_p0 }
   0xb   :  { %4858 = shalt.err (!%p4855_p2)
}
   0xc   :  { %s4859_s22 = scalar_lea.vmem %s44_s30, 12288  ;;  %p4864_p4 = scmp.lt.s32.totalorder %s44_s30, %s44_s30 }
   0xd   :  { %p4860_p3 = scmp.ne.s32.totalorder %s44_s30, %s4859_s22  ;;  %p4865_p5 = scmp.lt.s32.totalorder %s4859_s22, %s4859_s22 }
   0xf   :  { %p4866_p6 = por %p4865_p5, %p4864_p4 }
  0x11   :  { %p4867_p7 = pnand %p4866_p6, %p4860_p3 }
  0x13   :  { %4870 = shalt.err (!%p4867_p7)
}
  0x14   :  { %s5038_s23 = smov 384   ;;  %s5039_s24 = smov 24  }
  0x15   :  { %49 = dma.hbm_to_vmem [thread:$0]  %s5583_s1, 12288, %s44_s30, [#allocation6], %s5038_s23, %s5038_s23, %s5039_s24  }
  0x16   :  { %s5040_s27 = smov [#allocation8]   ;;  %s5041_s29 = smov [#allocation2]  }
  0x17   :  { %s70_s28 = sshll.u32 %s5040_s27, 4  ;;  %s31_s15 = sshll.u32 %s5041_s29, 4  ;;  %s71_s28 = int_to_ptr.vmem [resolvable:$true] %s70_s28  ;;  %s32_s15 = int_to_ptr.vmem [resolvable:$true] %s31_s15 }
  0x18   :  { %s4871_s18 = scalar_lea.hbm %s5586_s4, 32 }
  0x19   :  { %p4872_p8 = scmp.ne.s32.totalorder %s5586_s4, %s4871_s18  ;;  %p4875_p9 = scmp.lt.u32.totalorder %s4871_s18, %s5586_s4 }
  0x1b   :  { %p4877_p10 = pnand %p4875_p9, %p4872_p8 }
  0x1d   :  { %4880 = shalt.err (!%p4877_p10)
}
  0x1e   :  { %s4881_s1 = scalar_lea.vmem %s71_s28, 32  ;;  %p4886_p12 = scmp.lt.s32.totalorder %s71_s28, %s71_s28 }
  0x1f   :  { %p4882_p11 = scmp.ne.s32.totalorder %s71_s28, %s4881_s1  ;;  %p4887_p13 = scmp.lt.s32.totalorder %s4881_s1, %s4881_s1 }
  0x21   :  { %p4888_p0 = por %p4887_p13, %p4886_p12 }
  0x23   :  { %p4889_p1 = pnand %p4888_p0, %p4882_p11 }
  0x25   :  { %4892 = shalt.err (!%p4889_p1)
}
  0x26   :  { %73 = dma.hbm_to_vmem [thread:$0]  %s5586_s4, 32, %s71_s28, [#allocation9]  }
  0x27   :  { %s4893_s27 = scalar_lea.hbm %s5582_s0, 512 }
  0x28   :  { %p4894_p2 = scmp.ne.s32.totalorder %s5582_s0, %s4893_s27  ;;  %p4897_p3 = scmp.lt.u32.totalorder %s4893_s27, %s5582_s0 }
  0x2a   :  { %p4899_p4 = pnand %p4897_p3, %p4894_p2 }
  0x2c   :  { %4902 = shalt.err (!%p4899_p4)
}
  0x2d   :  { %s4903_s19 = scalar_lea.vmem %s32_s15, 512  ;;  %p4908_p6 = scmp.lt.s32.totalorder %s32_s15, %s32_s15 }
  0x2e   :  { %p4904_p5 = scmp.ne.s32.totalorder %s32_s15, %s4903_s19  ;;  %p4909_p7 = scmp.lt.s32.totalorder %s4903_s19, %s4903_s19 }
  0x30   :  { %p4910_p8 = por %p4909_p7, %p4908_p6 }
  0x32   :  { %p4911_p9 = pnand %p4910_p8, %p4904_p5 }
  0x34   :  { %4914 = shalt.err (!%p4911_p9)
}
  0x35   :  { %s5042_s4 = smov 256   ;;  %s5043_s28 = smov 16  }
  0x36   :  { %37 = dma.hbm_to_vmem [thread:$0]  %s5582_s0, 512, %s32_s15, [#allocation3], %s5042_s4, %s5042_s4, %s5043_s28  }
  0x37   :  { %s5044_s22 = smov [#allocation7]   ;;  %s4915_s25 = scalar_lea.hbm %s5585_s3, 4096 }
  0x38   :  { %s57_s1 = sshll.u32 %s5044_s22, 4  ;;  %p4916_p10 = scmp.ne.s32.totalorder %s5585_s3, %s4915_s25  ;;  %s58_s1 = int_to_ptr.vmem [resolvable:$true] %s57_s1 }
  0x39   :  { %p4919_p11 = scmp.lt.u32.totalorder %s4915_s25, %s5585_s3 }
  0x3b   :  { %p4921_p12 = pnand %p4919_p11, %p4916_p10 }
  0x3d   :  { %4924 = shalt.err (!%p4921_p12)
}
  0x3e   :  { %s4925_s17 = scalar_lea.vmem %s58_s1, 4096  ;;  %p4930_p0 = scmp.lt.s32.totalorder %s58_s1, %s58_s1 }
  0x3f   :  { %p4926_p13 = scmp.ne.s32.totalorder %s58_s1, %s4925_s17  ;;  %p4931_p1 = scmp.lt.s32.totalorder %s4925_s17, %s4925_s17 }
  0x41   :  { %p4932_p2 = por %p4931_p1, %p4930_p0 }
  0x43   :  { %p4933_p3 = pnand %p4932_p2, %p4926_p13 }
  0x45   :  { %4936 = shalt.err (!%p4933_p3)
}
  0x46   :  { %s5045_s0 = smov 128   ;;  %s5046_s15 = smov 8  }
  0x47   :  { %63 = dma.hbm_to_vmem [thread:$0]  %s5585_s3, 4096, %s58_s1, [#allocation6], %s5045_s0, %s5045_s0, %s5046_s15  }
  0x48   :  { %s5047_s20 = smov [#allocation10]   ;;  %s4937_s23 = scalar_lea.hbm %s5589_s7, 16384 }
  0x49   :  { %s83_s21 = sshll.u32 %s5047_s20, 4  ;;  %p4938_p4 = scmp.ne.s32.totalorder %s5589_s7, %s4937_s23  ;;  %s84_s21 = int_to_ptr.vmem [resolvable:$true] %s83_s21 }
  0x4a   :  { %p4941_p5 = scmp.lt.u32.totalorder %s4937_s23, %s5589_s7 }
  0x4c   :  { %p4943_p6 = pnand %p4941_p5, %p4938_p4 }
  0x4e   :  { %4946 = shalt.err (!%p4943_p6)
}
  0x4f   :  { %s4947_s16 = scalar_lea.vmem %s84_s21, 16384  ;;  %p4952_p8 = scmp.lt.s32.totalorder %s84_s21, %s84_s21 }
  0x50   :  { %p4948_p7 = scmp.ne.s32.totalorder %s84_s21, %s4947_s16  ;;  %p4953_p9 = scmp.lt.s32.totalorder %s4947_s16, %s4947_s16 }
  0x52   :  { %p4954_p10 = por %p4953_p9, %p4952_p8 }
  0x54   :  { %p4955_p11 = pnand %p4954_p10, %p4948_p7 }
  0x56   :  { %4958 = shalt.err (!%p4955_p11)
}
  0x57   :  { %s5048_s3 = smov 512   ;;  %s5049_s1 = smov 32  }
  0x58   :  { %89 = dma.hbm_to_vmem [thread:$0]  %s5589_s7, 16384, %s84_s21, [#allocation9], %s5048_s3, %s5048_s3, %s5049_s1  }
  0x59   :  { %s5050_s19 = smov [#allocation11]   ;;  %s4959_s23 = scalar_lea.hbm %s5591_s9, 16384 }
  0x5a   :  { %s97_s20 = sshll.u32 %s5050_s19, 4  ;;  %p4960_p12 = scmp.ne.s32.totalorder %s5591_s9, %s4959_s23  ;;  %s98_s20 = int_to_ptr.vmem [resolvable:$true] %s97_s20 }
  0x5b   :  { %p4963_p13 = scmp.lt.u32.totalorder %s4959_s23, %s5591_s9 }
  0x5d   :  { %p4965_p0 = pnand %p4963_p13, %p4960_p12 }
  0x5f   :  { %4968 = shalt.err (!%p4965_p0)
}
  0x60   :  { %s4969_s16 = scalar_lea.vmem %s98_s20, 16384  ;;  %p4974_p2 = scmp.lt.s32.totalorder %s98_s20, %s98_s20 }
  0x61   :  { %p4970_p1 = scmp.ne.s32.totalorder %s98_s20, %s4969_s16  ;;  %p4975_p3 = scmp.lt.s32.totalorder %s4969_s16, %s4969_s16 }
  0x63   :  { %p4976_p4 = por %p4975_p3, %p4974_p2 }
  0x65   :  { %p4977_p5 = pnand %p4976_p4, %p4970_p1 }
  0x67   :  { %4980 = shalt.err (!%p4977_p5)
}
  0x68   :  { %103 = dma.hbm_to_vmem [thread:$0]  %s5591_s9, 16384, %s98_s20, [#allocation12], %s5045_s0, %s5045_s0, %s5046_s15  }
  0x69   :  { %5025 = dma.done.wait [#allocation3], 512  }
  0x6a   :  { %5026 = vsyncadd [#allocation3], 4294966784 }
  0x6b   :  { %5027 = dma.done.wait [#allocation6], 16384  }
  0x6c   :  { %5028 = vsyncadd [#allocation6], 4294950912 }
  0x6d   :  { %5029 = dma.done.wait [#allocation9], 16416  }
  0x6e   :  { %5030 = vsyncadd [#allocation9], 4294950880 }
  0x6f   :  { %5031 = dma.done.wait [#allocation12], 16384  }
  0x70   :  { %5032 = vsyncadd [#allocation12], 4294950912  ;;  %v4436_v0 = vld [vmem:[#allocation5 + $0x4] ss:$24 sps:$4 sm:$0xff]   ;;  %v4438_v1 = vld [vmem:[#allocation5] ss:$24 sps:$4 sm:$0xff]  }
  0x71   :  { %743 = vmatprep.subr.bf16.mxu0 %v4436_v0  ;;  %v4439_v2 = vld [vmem:[#allocation5 + $0x34] ss:$24 sps:$4 sm:$0xff]   ;;  %v4441_v3 = vld [vmem:[#allocation5 + $0x30] ss:$24 sps:$4 sm:$0xff]   ;;  %v4442_v4 = vld [vmem:[#allocation5 + $0x64] ss:$24 sps:$4 sm:$0xff]  }
  0x72   :  { %744 = vmatpush1.bf16.msra.mxu0 %v4438_v1  ;;  %v4444_v5 = vld [vmem:[#allocation5 + $0x60] ss:$24 sps:$4 sm:$0xff]   ;;  %v4445_v6 = vld [vmem:[#allocation5 + $0x94] ss:$24 sps:$4 sm:$0xff]   ;;  %v4447_v7 = vld [vmem:[#allocation5 + $0x90] ss:$24 sps:$4 sm:$0xff]  }
  0x73   :  { %745 = vmatprep.subr.bf16.mxu0 %v4439_v2  ;;  %v4448_v8 = vld [vmem:[#allocation5 + $0xc4] ss:$24 sps:$4 sm:$0xff]   ;;  %v4450_v9 = vld [vmem:[#allocation5 + $0xc0] ss:$24 sps:$4 sm:$0xff]   ;;  %v4451_v10 = vld [vmem:[#allocation5 + $0xf4] ss:$24 sps:$4 sm:$0xff]  }
  0x74   :  { %v4453_v11 = vld [vmem:[#allocation5 + $0xf0] ss:$24 sps:$4 sm:$0xff]   ;;  %v4454_v12 = vld [vmem:[#allocation5 + $0x124] ss:$24 sps:$4 sm:$0xff]   ;;  %v4456_v16 = vld [vmem:[#allocation5 + $0x120] ss:$24 sps:$4 sm:$0xff]  }
  0x75   :  { %v130_v13 = vld [vmem:[#allocation2 + $0x8] sm:$0xff]  ;;  %v132_v14 = vld [vmem:[#allocation2 + $0x18] sm:$0xff]  ;;  %v129_v35 = vld [vmem:[#allocation2] sm:$0xff]  ;;  %vm5052_vm0 = vmmov 0   ;;  %vm1093_vm1 = vcmask 1043456   ;;  %vm958_vm2 = vcmask 64512  }
  0x76   :  { %746 = vmatpush1.bf16.msra.mxu0 %v4441_v3  ;;  %v5221_v15 = vpack.c.bf16 %v132_v14, %v130_v13  ;;  %v4457_v17 = vld [vmem:[#allocation5 + $0x154] ss:$24 sps:$4 sm:$0xff]   ;;  %v4459_v18 = vld [vmem:[#allocation5 + $0x150] ss:$24 sps:$4 sm:$0xff]   ;;  %v4460_v19 = vld [vmem:[#allocation5 + $0x184] ss:$24 sps:$4 sm:$0xff]  }
  0x77   :  { %747 = vmatprep.subr.bf16.mxu0 %v4442_v4  ;;  %v4462_v20 = vld [vmem:[#allocation5 + $0x180] ss:$24 sps:$4 sm:$0xff]   ;;  %v4463_v21 = vld [vmem:[#allocation5 + $0x1b4] ss:$24 sps:$4 sm:$0xff]   ;;  %v4465_v22 = vld [vmem:[#allocation5 + $0x1b0] ss:$24 sps:$4 sm:$0xff]  }
  0x78   :  { %775 = vmatprep.mubr.bf16.mxu0 %v5221_v15  ;;  %v4466_v23 = vld [vmem:[#allocation5 + $0x1e4] ss:$24 sps:$4 sm:$0xff]   ;;  %v4468_v24 = vld [vmem:[#allocation5 + $0x1e0] ss:$24 sps:$4 sm:$0xff]   ;;  %v4469_v25 = vld [vmem:[#allocation5 + $0x214] ss:$24 sps:$4 sm:$0xff]  }
  0x79   :  { %v4471_v26 = vld [vmem:[#allocation5 + $0x210] ss:$24 sps:$4 sm:$0xff]   ;;  %v4472_v27 = vld [vmem:[#allocation5 + $0x244] ss:$24 sps:$4 sm:$0xff]   ;;  %v4474_v28 = vld [vmem:[#allocation5 + $0x240] ss:$24 sps:$4 sm:$0xff]  }
  0x7a   :  { %748 = vmatpush1.bf16.msra.mxu0 %v4444_v5  ;;  %v4475_v29 = vld [vmem:[#allocation5 + $0x274] ss:$24 sps:$4 sm:$0xff]   ;;  %v4477_v30 = vld [vmem:[#allocation5 + $0x270] ss:$24 sps:$4 sm:$0xff]   ;;  %v4478_v31 = vld [vmem:[#allocation5 + $0x2a4] ss:$24 sps:$4 sm:$0xff]  }
  0x7b   :  { %749 = vmatprep.subr.bf16.mxu0 %v4445_v6  ;;  %v4480_v32 = vld [vmem:[#allocation5 + $0x2a0] ss:$24 sps:$4 sm:$0xff]   ;;  %v4481_v33 = vld [vmem:[#allocation5 + $0x2d4] ss:$24 sps:$4 sm:$0xff]   ;;  %v4483_v34 = vld [vmem:[#allocation5 + $0x2d0] ss:$24 sps:$4 sm:$0xff]  }
  0x7c   :  { %v131_v36 = vld [vmem:[#allocation2 + $0x10] sm:$0xff]  ;;  %v4486_v37 = vld [vmem:[#allocation5 + $0xc] ss:$24 sps:$4 sm:$0xff]   ;;  %v4484_v38 = vld [vmem:[#allocation5 + $0x8] ss:$24 sps:$4 sm:$0xff]   ;;  %s5058_s20 = smov 56  }
  0x7d   :  { %v5224_v39 = vpack.c.bf16 %v131_v36, %v129_v35  ;;  %v4489_v40 = vld [vmem:[#allocation5 + $0x3c] ss:$24 sps:$4 sm:$0xff]   ;;  %v4487_v41 = vld [vmem:[#allocation5 + $0x38] ss:$24 sps:$4 sm:$0xff]   ;;  %v4492_v42 = vld [vmem:[#allocation5 + $0x6c] ss:$24 sps:$4 sm:$0xff]  }
  0x7e   :  { %750 = vmatpush1.bf16.msra.mxu0 %v4447_v7  ;;  %v4490_v43 = vld [vmem:[#allocation5 + $0x68] ss:$24 sps:$4 sm:$0xff]   ;;  %v4495_v44 = vld [vmem:[#allocation5 + $0x9c] ss:$24 sps:$4 sm:$0xff]   ;;  %v4493_v45 = vld [vmem:[#allocation5 + $0x98] ss:$24 sps:$4 sm:$0xff]  }
  0x7f   :  { %751 = vmatprep.subr.bf16.mxu0 %v4448_v8  ;;  %v4498_v46 = vld [vmem:[#allocation5 + $0xcc] ss:$24 sps:$4 sm:$0xff]   ;;  %v4496_v47 = vld [vmem:[#allocation5 + $0xc8] ss:$24 sps:$4 sm:$0xff]   ;;  %v4501_v48 = vld [vmem:[#allocation5 + $0xfc] ss:$24 sps:$4 sm:$0xff]  }
  0x80   :  { %v4499_v49 = vld [vmem:[#allocation5 + $0xf8] ss:$24 sps:$4 sm:$0xff]   ;;  %v4504_v50 = vld [vmem:[#allocation5 + $0x12c] ss:$24 sps:$4 sm:$0xff]   ;;  %v4502_v51 = vld [vmem:[#allocation5 + $0x128] ss:$24 sps:$4 sm:$0xff]  }
  0x81   :  { %v4507_v52 = vld [vmem:[#allocation5 + $0x15c] ss:$24 sps:$4 sm:$0xff]   ;;  %v4505_v53 = vld [vmem:[#allocation5 + $0x158] ss:$24 sps:$4 sm:$0xff]   ;;  %v4510_v54 = vld [vmem:[#allocation5 + $0x18c] ss:$24 sps:$4 sm:$0xff]  }
  0x82   :  { %752 = vmatpush1.bf16.msra.mxu0 %v4450_v9  ;;  %v4508_v55 = vld [vmem:[#allocation5 + $0x188] ss:$24 sps:$4 sm:$0xff]   ;;  %v4513_v56 = vld [vmem:[#allocation5 + $0x1bc] ss:$24 sps:$4 sm:$0xff]   ;;  %v4511_v57 = vld [vmem:[#allocation5 + $0x1b8] ss:$24 sps:$4 sm:$0xff]  }
  0x83   :  { %753 = vmatprep.subr.bf16.mxu0 %v4451_v10  ;;  %v4516_v58 = vld [vmem:[#allocation5 + $0x1ec] ss:$24 sps:$4 sm:$0xff]   ;;  %v4514_v59 = vld [vmem:[#allocation5 + $0x1e8] ss:$24 sps:$4 sm:$0xff]   ;;  %v4519_v60 = vld [vmem:[#allocation5 + $0x21c] ss:$24 sps:$4 sm:$0xff]  }
  0x84   :  { %v4517_v61 = vld [vmem:[#allocation5 + $0x218] ss:$24 sps:$4 sm:$0xff]   ;;  %v4522_v62 = vld [vmem:[#allocation5 + $0x24c] ss:$24 sps:$4 sm:$0xff]   ;;  %v4520_v63 = vld [vmem:[#allocation5 + $0x248] ss:$24 sps:$4 sm:$0xff]  }
  0x85   :  { %v4525_v0 = vld [vmem:[#allocation5 + $0x27c] ss:$24 sps:$4 sm:$0xff]   ;;  %v4523_v1 = vld [vmem:[#allocation5 + $0x278] ss:$24 sps:$4 sm:$0xff]   ;;  %v4528_v2 = vld [vmem:[#allocation5 + $0x2ac] ss:$24 sps:$4 sm:$0xff]  }
  0x86   :  { %754 = vmatpush1.bf16.msra.mxu0 %v4453_v11  ;;  %v4526_v3 = vld [vmem:[#allocation5 + $0x2a8] ss:$24 sps:$4 sm:$0xff]   ;;  %v4531_v4 = vld [vmem:[#allocation5 + $0x2dc] ss:$24 sps:$4 sm:$0xff]   ;;  %v4529_v5 = vld [vmem:[#allocation5 + $0x2d8] ss:$24 sps:$4 sm:$0xff]  }
  0x87   :  { %755 = vmatprep.subr.bf16.mxu0 %v4454_v12  ;;  %v4534_v6 = vld [vmem:[#allocation5 + $0x14] ss:$24 sps:$4 sm:$0xff]   ;;  %v4532_v7 = vld [vmem:[#allocation5 + $0x10] ss:$24 sps:$4 sm:$0xff]   ;;  %v4537_v8 = vld [vmem:[#allocation5 + $0x44] ss:$24 sps:$4 sm:$0xff]  }
  0x88   :  { %v4535_v9 = vld [vmem:[#allocation5 + $0x40] ss:$24 sps:$4 sm:$0xff]   ;;  %v4540_v10 = vld [vmem:[#allocation5 + $0x74] ss:$24 sps:$4 sm:$0xff]   ;;  %v4538_v11 = vld [vmem:[#allocation5 + $0x70] ss:$24 sps:$4 sm:$0xff]  }
  0x89   :  { %v4543_v12 = vld [vmem:[#allocation5 + $0xa4] ss:$24 sps:$4 sm:$0xff]   ;;  %v4541_v13 = vld [vmem:[#allocation5 + $0xa0] ss:$24 sps:$4 sm:$0xff]   ;;  %v4546_v14 = vld [vmem:[#allocation5 + $0xd4] ss:$24 sps:$4 sm:$0xff]  }
  0x8a   :  { %756 = vmatpush1.bf16.msra.mxu0 %v4456_v16  ;;  %v4544_v16 = vld [vmem:[#allocation5 + $0xd0] ss:$24 sps:$4 sm:$0xff]   ;;  %v4579_v36 = vld [vmem:[#allocation5 + $0x2e4] ss:$24 sps:$4 sm:$0xff]   ;;  %s5059_s22 = smov 48   ;;  %vm1076_vm3 = vcmask 130048  }
  0x8b   :  { %757 = vmatprep.subr.bf16.mxu0 %v4457_v17  ;;  %v4549_v17 = vld [vmem:[#allocation5 + $0x104] ss:$24 sps:$4 sm:$0xff]   ;;  %v4574_v35 = vld [vmem:[#allocation5 + $0x2b0] ss:$24 sps:$4 sm:$0xff]   ;;  %vm1078_vm4 = vcmask 195584   ;;  %vm1080_vm5 = vcmask 261120  }
  0x8c   :  { %vm1082_vm6 = vcmask 326656   ;;  %vm1084_vm7 = vcmask 392192   ;;  %vm1086_vm8 = vcmask 457728   ;;  %vm1490_vm9 = vcmask 523264  }
  0x8e   :  { %758 = vmatpush1.bf16.msra.mxu0 %v4459_v18  ;;  %v4547_v18 = vld [vmem:[#allocation5 + $0x100] ss:$24 sps:$4 sm:$0xff]  }
  0x8f   :  { %759 = vmatprep.subr.bf16.mxu0 %v4460_v19  ;;  %v4550_v19 = vld [vmem:[#allocation5 + $0x130] ss:$24 sps:$4 sm:$0xff]  }
  0x92   :  { %760 = vmatpush1.bf16.msra.mxu0 %v4462_v20  ;;  %v4555_v20 = vld [vmem:[#allocation5 + $0x164] ss:$24 sps:$4 sm:$0xff]  }
  0x93   :  { %761 = vmatprep.subr.bf16.mxu0 %v4463_v21  ;;  %v4553_v21 = vld [vmem:[#allocation5 + $0x160] ss:$24 sps:$4 sm:$0xff]  }
  0x96   :  { %762 = vmatpush1.bf16.msra.mxu0 %v4465_v22  ;;  %v4558_v22 = vld [vmem:[#allocation5 + $0x194] ss:$24 sps:$4 sm:$0xff]  }
  0x97   :  { %763 = vmatprep.subr.bf16.mxu0 %v4466_v23  ;;  %v4556_v23 = vld [vmem:[#allocation5 + $0x190] ss:$24 sps:$4 sm:$0xff]  }
  0x9a   :  { %764 = vmatpush1.bf16.msra.mxu0 %v4468_v24  ;;  %v4561_v24 = vld [vmem:[#allocation5 + $0x1c4] ss:$24 sps:$4 sm:$0xff]  }
  0x9b   :  { %765 = vmatprep.subr.bf16.mxu0 %v4469_v25  ;;  %v4559_v25 = vld [vmem:[#allocation5 + $0x1c0] ss:$24 sps:$4 sm:$0xff]  }
  0x9e   :  { %766 = vmatpush1.bf16.msra.mxu0 %v4471_v26  ;;  %v4564_v26 = vld [vmem:[#allocation5 + $0x1f4] ss:$24 sps:$4 sm:$0xff]  }
  0x9f   :  { %767 = vmatprep.subr.bf16.mxu0 %v4472_v27  ;;  %v4562_v27 = vld [vmem:[#allocation5 + $0x1f0] ss:$24 sps:$4 sm:$0xff]  }
  0xa2   :  { %768 = vmatpush1.bf16.msra.mxu0 %v4474_v28  ;;  %v4567_v28 = vld [vmem:[#allocation5 + $0x224] ss:$24 sps:$4 sm:$0xff]  }
  0xa3   :  { %769 = vmatprep.subr.bf16.mxu0 %v4475_v29  ;;  %v4565_v29 = vld [vmem:[#allocation5 + $0x220] ss:$24 sps:$4 sm:$0xff]  }
  0xa6   :  { %770 = vmatpush1.bf16.msra.mxu0 %v4477_v30  ;;  %v4570_v30 = vld [vmem:[#allocation5 + $0x254] ss:$24 sps:$4 sm:$0xff]  }
  0xa7   :  { %771 = vmatprep.subr.bf16.mxu0 %v4478_v31  ;;  %v4568_v31 = vld [vmem:[#allocation5 + $0x250] ss:$24 sps:$4 sm:$0xff]  }
  0xaa   :  { %772 = vmatpush1.bf16.msra.mxu0 %v4480_v32  ;;  %v4573_v32 = vld [vmem:[#allocation5 + $0x284] ss:$24 sps:$4 sm:$0xff]  }
  0xab   :  { %773 = vmatprep.subr.bf16.mxu0 %v4481_v33  ;;  %v4571_v33 = vld [vmem:[#allocation5 + $0x280] ss:$24 sps:$4 sm:$0xff]  }
  0xae   :  { %774 = vmatpush1.bf16.msra.mxu0 %v4483_v34  ;;  %v4576_v34 = vld [vmem:[#allocation5 + $0x2b4] ss:$24 sps:$4 sm:$0xff]  }
  0xaf   :  { %786 = vmatprep.subr.bf16.mxu0 %v4486_v37  ;;  %v4577_v37 = vld [vmem:[#allocation5 + $0x2e0] ss:$24 sps:$4 sm:$0xff]  }
  0xb1   :  { %776 = vmatmul.mubr.bf16.vlgmr.msra.gmra.mrb[0].mxu0 %v5224_v39 }
  0xb2   :  { %787 = vmatpush1.bf16.msra.mxu0 %v4484_v38  ;;  %818 = vmatprep.mubr.bf16.mxu0 %v5221_v15  ;;  %v5051_v38 = vmov 0.0  }
  0xb3   :  { %788 = vmatprep.subr.bf16.mxu0 %v4489_v40  ;;  %4370 = vmatprep.subr.bf16.mxu1 %v5051_v38 }
  0xb4   :  { %4372 = vmatprep.mubr.msk.bf16.mxu1 %vm5052_vm0, %v5051_v38 }
  0xb6   :  { %789 = vmatpush1.bf16.msra.mxu0 %v4487_v41 }
  0xb7   :  { %790 = vmatprep.subr.bf16.mxu0 %v4492_v42 }
  0xba   :  { %791 = vmatpush1.bf16.msra.mxu0 %v4490_v43 }
  0xbb   :  { %792 = vmatprep.subr.bf16.mxu0 %v4495_v44  ;;  %v233_v44 = vlaneseq }
  0xbe   :  { %793 = vmatpush1.bf16.msra.mxu0 %v4493_v45  ;;  %v5237_v45 = vshrl.u32 %v233_v44, 7 }
  0xbf   :  { %794 = vmatprep.subr.bf16.mxu0 %v4498_v46 }
  0xc0   :  { %v247_v46 = vsub.s32 3, %v5237_v45 }
  0xc2   :  { %795 = vmatpush1.bf16.msra.mxu0 %v4496_v47  ;;  %v231_v47 = vld [vmem:[%s5584_s2] sm:$0x3f] }
  0xc3   :  { %796 = vmatprep.subr.bf16.mxu0 %v4501_v48 }
  0xc6   :  { %797 = vmatpush1.bf16.msra.mxu0 %v4499_v49  ;;  %v5245_v49 = vsub.s32 0, %v5237_v45 }
  0xc7   :  { %798 = vmatprep.subr.bf16.mxu0 %v4504_v50  ;;  %v248_v50 = vrot.slane %v231_v47, %v247_v46 }
  0xca   :  { %799 = vmatpush1.bf16.msra.mxu0 %v4502_v51  ;;  %v5248_v51 = vsub.s32 1, %v5237_v45 }
  0xcb   :  { %800 = vmatprep.subr.bf16.mxu0 %v4507_v52 }
  0xce   :  { %801 = vmatpush1.bf16.msra.mxu0 %v4505_v53 }
  0xcf   :  { %802 = vmatprep.subr.bf16.mxu0 %v4510_v54 }
  0xd2   :  { %803 = vmatpush1.bf16.msra.mxu0 %v4508_v55  ;;  %v236_v55 = vrot.slane %v231_v47, %v5245_v49 }
  0xd3   :  { %804 = vmatprep.subr.bf16.mxu0 %v4513_v56 }
  0xd6   :  { %805 = vmatpush1.bf16.msra.mxu0 %v4511_v57 }
  0xd7   :  { %806 = vmatprep.subr.bf16.mxu0 %v4516_v58  ;;  %v240_v58 = vrot.slane %v231_v47, %v5248_v51 }
  0xda   :  { %807 = vmatpush1.bf16.msra.mxu0 %v4514_v59 }
  0xdb   :  { %808 = vmatprep.subr.bf16.mxu0 %v4519_v60 }
  0xde   :  { %809 = vmatpush1.bf16.msra.mxu0 %v4517_v61 }
  0xdf   :  { %810 = vmatprep.subr.bf16.mxu0 %v4522_v62 }
  0xe2   :  { %811 = vmatpush1.bf16.msra.mxu0 %v4520_v63 }
  0xe3   :  { %812 = vmatprep.subr.bf16.mxu0 %v4525_v0 }
  0xe6   :  { %813 = vmatpush1.bf16.msra.mxu0 %v4523_v1 }
  0xe7   :  { %814 = vmatprep.subr.bf16.mxu0 %v4528_v2 }
  0xea   :  { %815 = vmatpush1.bf16.msra.mxu0 %v4526_v3 }
  0xeb   :  { %816 = vmatprep.subr.bf16.mxu0 %v4531_v4 }
  0xee   :  { %817 = vmatpush1.bf16.msra.mxu0 %v4529_v5 }
  0xef   :  { %829 = vmatprep.subr.bf16.mxu0 %v4534_v6 }
  0xf1   :  { %819 = vmatmul.mubr.bf16.vlgmr.msra.gmra.mrb[4].mxu0 %v5224_v39 }
  0xf2   :  { %830 = vmatpush1.bf16.msra.mxu0 %v4532_v7  ;;  %861 = vmatprep.mubr.bf16.mxu0 %v5221_v15  ;;  %v4552_v15 = vld [vmem:[#allocation5 + $0x134] ss:$24 sps:$4 sm:$0xff]  }
  0xf3   :  { %831 = vmatprep.subr.bf16.mxu0 %v4537_v8 }
  0xf6   :  { %832 = vmatpush1.bf16.msra.mxu0 %v4535_v9 }
  0xf7   :  { %833 = vmatprep.subr.bf16.mxu0 %v4540_v10  ;;  %v251_v10 = vsub.s32 4, %v5237_v45 }
  0xfa   :  { %834 = vmatpush1.bf16.msra.mxu0 %v4538_v11  ;;  %v255_v11 = vsub.s32 5, %v5237_v45 }
  0xfb   :  { %835 = vmatprep.subr.bf16.mxu0 %v4543_v12  ;;  %v252_v12 = vrot.slane %v231_v47, %v251_v10 }
  0xfe   :  { %836 = vmatpush1.bf16.msra.mxu0 %v4541_v13  ;;  %v256_v13 = vrot.slane %v231_v47, %v255_v11 }
  0xff   :  { %837 = vmatprep.subr.bf16.mxu0 %v4546_v14 }
 0x102   :  { %838 = vmatpush1.bf16.msra.mxu0 %v4544_v16 }
 0x103   :  { %839 = vmatprep.subr.bf16.mxu0 %v4549_v17 }
 0x106   :  { %840 = vmatpush1.bf16.msra.mxu0 %v4547_v18 }
 0x107   :  { %841 = vmatprep.subr.bf16.mxu0 %v4552_v15 }
 0x10a   :  { %842 = vmatpush1.bf16.msra.mxu0 %v4550_v19 }
 0x10b   :  { %843 = vmatprep.subr.bf16.mxu0 %v4555_v20 }
 0x10e   :  { %844 = vmatpush1.bf16.msra.mxu0 %v4553_v21 }
 0x10f   :  { %845 = vmatprep.subr.bf16.mxu0 %v4558_v22 }
 0x112   :  { %846 = vmatpush1.bf16.msra.mxu0 %v4556_v23 }
 0x113   :  { %847 = vmatprep.subr.bf16.mxu0 %v4561_v24 }
 0x116   :  { %848 = vmatpush1.bf16.msra.mxu0 %v4559_v25 }
 0x117   :  { %849 = vmatprep.subr.bf16.mxu0 %v4564_v26 }
 0x11a   :  { %850 = vmatpush1.bf16.msra.mxu0 %v4562_v27 }
 0x11b   :  { %851 = vmatprep.subr.bf16.mxu0 %v4567_v28 }
 0x11e   :  { %852 = vmatpush1.bf16.msra.mxu0 %v4565_v29 }
 0x11f   :  { %853 = vmatprep.subr.bf16.mxu0 %v4570_v30 }
 0x122   :  { %854 = vmatpush1.bf16.msra.mxu0 %v4568_v31 }
 0x123   :  { %855 = vmatprep.subr.bf16.mxu0 %v4573_v32 }
 0x126   :  { %856 = vmatpush1.bf16.msra.mxu0 %v4571_v33 }
 0x127   :  { %857 = vmatprep.subr.bf16.mxu0 %v4576_v34 }
 0x12a   :  { %858 = vmatpush1.bf16.msra.mxu0 %v4574_v35 }
 0x12b   :  { %859 = vmatprep.subr.bf16.mxu0 %v4579_v36 }
 0x12e   :  { %860 = vmatpush1.bf16.msra.mxu0 %v4577_v37 }
 0x12f   :  { %4346 = vmatprep.subr.bf16.mxu0 %v5051_v38 }
 0x131   :  { %862 = vmatmul.mubr.bf16.vlgmr.msra.gmra.mrb[8].mxu0 %v5224_v39  ;;  %v243_v39 = vsub.s32 2, %v5237_v45 }
 0x132   :  { %4348 = vmatprep.mubr.msk.bf16.mxu0 %vm5052_vm0, %v5051_v38 }
 0x133   :  { %v244_v48 = vrot.slane %v231_v47, %v243_v39 }
 0x184   :  { %v777_v40 = vpop.f32.mrb[0].mxu0 }
 0x185   :  { %v779_v41 = vpop.f32.mrb[1].mxu0  ;;  %v778_v62 = vadd.f32 %v777_v40, %v236_v55 }
 0x186   :  { %v781_v42 = vpop.f32.mrb[2].mxu0  ;;  %v780_v63 = vadd.f32 %v779_v41, %v240_v58 }
 0x187   :  { %v783_v43 = vpop.f32.mrb[3].mxu0  ;;  %v872_v2 = vpack.c.bf16 %v778_v62, %v778_v62  ;;  %v782_v6 = vadd.f32 %v781_v42, %v236_v55 }
 0x188   :  { %v1183_v3 = vpack.c.bf16 %v780_v63, %v780_v63  ;;  %v784_v7 = vadd.f32 %v783_v43, %v240_v58 }
 0x189   :  { %v873_v8 = vpack.c.bf16 %v782_v6, %v782_v6 }
 0x18a   :  { %v1184_v9 = vpack.c.bf16 %v784_v7, %v784_v7 }
 0x1c4   :  { %v820_v52 = vpop.f32.mrb[4].mxu0 }
 0x1c5   :  { %v821_v53 = vadd.f32 %v820_v52, %v244_v48  ;;  %v822_v54 = vpop.f32.mrb[5].mxu0 }
 0x1c6   :  { %v823_v56 = vadd.f32 %v822_v54, %v248_v50  ;;  %v824_v57 = vpop.f32.mrb[6].mxu0 }
 0x1c7   :  { %v874_v59 = vpack.c.bf16 %v821_v53, %v821_v53  ;;  %v826_v60 = vpop.f32.mrb[7].mxu0  ;;  %v825_v0 = vadd.f32 %v824_v57, %v244_v48 }
 0x1c8   :  { %v1185_v61 = vpack.c.bf16 %v823_v56, %v823_v56  ;;  %v827_v1 = vadd.f32 %v826_v60, %v248_v50 }
 0x1c9   :  { %4347 = vmatpush3.bf16.xpose.msra.mxu0 %v874_v59  ;;  %v875_v4 = vpack.c.bf16 %v825_v0, %v825_v0 }
 0x1ca   :  { %4371 = vmatpush3.bf16.xpose.msra.mxu1 %v1185_v61  ;;  %4352 = vmatprep.subr.bf16.mxu0 %v5051_v38  ;;  %v1186_v5 = vpack.c.bf16 %v827_v1, %v827_v1 }
 0x1cb   :  { %4376 = vmatprep.subr.bf16.mxu1 %v5051_v38 }
 0x1d0   :  { %4349 = vmatmul.mubr.bf16.vlgmr.msra.gmra.mrb[12].mxu0 %v872_v2 }
 0x1d1   :  { %4353 = vmatpush3.bf16.xpose.msra.mxu0 %v875_v4  ;;  %4373 = vmatmul.mubr.bf16.vlgmr.msra.gmra.mrb[0].mxu1 %v1183_v3 }
 0x1d2   :  { %4377 = vmatpush3.bf16.xpose.msra.mxu1 %v1186_v5  ;;  %4354 = vmatprep.mubr.msk.bf16.mxu0 %vm5052_vm0, %v5051_v38 }
 0x1d3   :  { %4378 = vmatprep.mubr.msk.bf16.mxu1 %vm5052_vm0, %v5051_v38  ;;  %4382 = vmatprep.subr.bf16.mxu1 %v5051_v38 }
 0x1d4   :  { %4358 = vmatprep.subr.bf16.mxu0 %v5051_v38 }
 0x1d8   :  { %4355 = vmatmul.mubr.bf16.vlgmr.msra.gmra.mrb[16].mxu0 %v873_v8 }
 0x1d9   :  { %4379 = vmatmul.mubr.bf16.vlgmr.msra.gmra.mrb[4].mxu1 %v1184_v9  ;;  %4360 = vmatprep.mubr.msk.bf16.mxu0 %vm5052_vm0, %v5051_v38 }
 0x1da   :  { %4384 = vmatprep.mubr.msk.bf16.mxu1 %vm5052_vm0, %v5051_v38 }
 0x204   :  { %v863_v14 = vpop.f32.mrb[8].mxu0 }
 0x205   :  { %v864_v16 = vadd.f32 %v863_v14, %v252_v12  ;;  %v865_v17 = vpop.f32.mrb[9].mxu0 }
 0x206   :  { %v866_v18 = vadd.f32 %v865_v17, %v256_v13  ;;  %v867_v15 = vpop.f32.mrb[10].mxu0 }
 0x207   :  { %v876_v19 = vpack.c.bf16 %v864_v16, %v864_v16  ;;  %v868_v20 = vadd.f32 %v867_v15, %v252_v12  ;;  %v869_v21 = vpop.f32.mrb[11].mxu0 }
 0x208   :  { %v1187_v22 = vpack.c.bf16 %v866_v18, %v866_v18  ;;  %v870_v23 = vadd.f32 %v869_v21, %v256_v13  ;;  %v5053_v13 = vmov 1983009808  }
 0x209   :  { %v1095_v24 = vsel %vm1093_vm1, %v876_v19, 0  ;;  %v877_v25 = vpack.c.bf16 %v868_v20, %v868_v20  ;;  %v983_v14 = vunpack.c.l.s4 %v5053_v13  ;;  %v4609_v13 = vld [vmem:[#allocation7 + $0x94] ss:$8 sps:$4 sm:$0xff]  }
 0x20a   :  { %v1398_v26 = vsel %vm1093_vm1, %v1187_v22, 0  ;;  %v1188_v27 = vpack.c.bf16 %v870_v23, %v870_v23  ;;  %4359 = vmatpush3.bf16.msra.mxu0 %v1095_v24  ;;  %v4582_v23 = vld [vmem:[#allocation7 + $0x4] ss:$8 sps:$4 sm:$0xff]  }
 0x20b   :  { %v5269_v28 = vsel %vm1093_vm1, %v877_v25, 0  ;;  %4383 = vmatpush3.bf16.msra.mxu1 %v1398_v26  ;;  %4364 = vmatprep.subr.bf16.mxu0 %v5051_v38  ;;  %v984_v19 = vunpack.c.0.s8 %v983_v14  ;;  %v4607_v14 = vld [vmem:[#allocation7 + $0x90] ss:$8 sps:$4 sm:$0xff]  }
 0x20c   :  { %v5273_v29 = vsel %vm1093_vm1, %v1188_v27, 0  ;;  %4388 = vmatprep.subr.bf16.mxu1 %v5051_v38 }
 0x20d   :  { %v987_v24 = vsub.s32 %v984_v19, %v5237_v45  ;;  %v4618_v19 = vld [vmem:[#allocation7 + $0xc4] ss:$8 sps:$4 sm:$0xff]  }
 0x2a3   :  { %v912_v30 = vpop.f32.mrb[12].mxu0 }
 0x2a4   :  { %v4350_v31 = vpop.f32.mrb[13].mxu0  ;;  %v1223_v32 = vpop.f32.mrb[0].mxu1  ;;  %v959_v41 = vsel %vm958_vm2, %v912_v30, -inf }
 0x2a5   :  { %v915_v33 = vpop.f32.mrb[14].mxu0  ;;  %v4374_v34 = vpop.f32.mrb[1].mxu1  ;;  %v1269_v35 = vsel %vm958_vm2, %v1223_v32, -inf }
 0x2a6   :  { %1270 = vmax.xlane.f32.xlu0 %v1269_v35  ;;  %v4351_v36 = vpop.f32.mrb[15].mxu0  ;;  %v1226_v37 = vpop.f32.mrb[2].mxu1  ;;  %v5054_v34 = vmov 1934713408  }
 0x2a7   :  { %v4375_v40 = vpop.f32.mrb[3].mxu1  ;;  %v1014_v35 = vunpack.c.l.s4 %v5054_v34 }
 0x2aa   :  { %960 = vmax.xlane.f32.xlu0 %v959_v41 }
 0x2ab   :  { %v952_v42 = vpop.f32.mrb[16].mxu0 }
 0x2ac   :  { %v4356_v43 = vpop.f32.mrb[17].mxu0  ;;  %v1263_v44 = vpop.f32.mrb[4].mxu1  ;;  %v962_v53 = vsel %vm958_vm2, %v952_v42, -inf }
 0x2ad   :  { %v955_v39 = vpop.f32.mrb[18].mxu0  ;;  %v4380_v46 = vpop.f32.mrb[5].mxu1  ;;  %v1272_v47 = vsel %vm958_vm2, %v1263_v44, -inf }
 0x2ae   :  { %1273 = vmax.xlane.f32.xlu1 %v1272_v47  ;;  %v4357_v48 = vpop.f32.mrb[19].mxu0  ;;  %v1266_v50 = vpop.f32.mrb[6].mxu1  ;;  %v4585_v39 = vld [vmem:[#allocation7 + $0x14] ss:$8 sps:$4 sm:$0xff]  }
 0x2af   :  { %v4381_v52 = vpop.f32.mrb[7].mxu1 }
 0x2b2   :  { %963 = vmax.xlane.f32.xlu1 %v962_v53  ;;  %v1015_v53 = vunpack.c.0.s8 %v1014_v35 }
 0x333   :  { %v1271_v54 = vpop.xlane.xlu0 %1270 }
 0x334   :  { %v1275_v55 = vsub.f32 %v1223_v32, %v1271_v54  ;;  %v4583_v54 = vld [vmem:[#allocation7 + $0x10] ss:$8 sps:$4 sm:$0xff]  }
 0x336   :  { %v1277_v56 = vmul.f32 1.442695, %v1275_v55 }
 0x337   :  { %v961_v57 = vpop.xlane.xlu0 %960 }
 0x338   :  { %4821 = vpow2.f32 %v1277_v56  ;;  %v965_v58 = vsub.f32 %v912_v30, %v961_v57 }
 0x33a   :  { %v967_v59 = vmul.f32 1.442695, %v965_v58 }
 0x33b   :  { %v1274_v60 = vpop.xlane.xlu1 %1273 }
 0x33c   :  { %4823 = vpow2.f32 %v967_v59  ;;  %v1276_v61 = vsub.f32 %v1263_v44, %v1274_v60  ;;  %v4588_v59 = vld [vmem:[#allocation7 + $0x24] ss:$8 sps:$4 sm:$0xff]  }
 0x33e   :  { %v1279_v62 = vmul.f32 1.442695, %v1276_v61  ;;  %v5330_v61 = vsub.s32 %v1015_v53, %v5237_v45 }
 0x33f   :  { %v964_v63 = vpop.xlane.xlu1 %963 }
 0x340   :  { %4825 = vpow2.f32 %v1279_v62  ;;  %v966_v0 = vsub.f32 %v952_v42, %v964_v63  ;;  %v4580_v42 = vld [vmem:[#allocation7] ss:$8 sps:$4 sm:$0xff]  }
 0x341   :  { %v4586_v63 = vld [vmem:[#allocation7 + $0x20] ss:$8 sps:$4 sm:$0xff]  }
 0x342   :  { %v4822_v1 = vpop.eup %4821  ;;  %v969_v2 = vmul.f32 1.442695, %v966_v0  ;;  %v4591_v0 = vld [vmem:[#allocation7 + $0x34] ss:$8 sps:$4 sm:$0xff]  }
 0x343   :  { %v1281_v3 = vsel %vm958_vm2, %v4822_v1, 0.0 }
 0x344   :  { %4827 = vpow2.f32 %v969_v2  ;;  %1282 = vadd.xlane.f32.xlu0 %v1281_v3  ;;  %v4589_v2 = vld [vmem:[#allocation7 + $0x30] ss:$8 sps:$4 sm:$0xff]   ;;  %v4594_v3 = vld [vmem:[#allocation7 + $0x44] ss:$8 sps:$4 sm:$0xff]  }
 0x346   :  { %v4824_v4 = vpop.eup %4823 }
 0x347   :  { %v971_v5 = vsel %vm958_vm2, %v4824_v4, 0.0 }
 0x348   :  { %972 = vadd.xlane.f32.xlu1 %v971_v5  ;;  %v4597_v5 = vld [vmem:[#allocation7 + $0x54] ss:$8 sps:$4 sm:$0xff]  }
 0x34a   :  { %v4826_v6 = vpop.eup %4825 }
 0x34b   :  { %v1284_v7 = vsel %vm958_vm2, %v4826_v6, 0.0 }
 0x34c   :  { %1285 = vadd.xlane.f32.xlu0 %v1284_v7  ;;  %v4600_v7 = vld [vmem:[#allocation7 + $0x64] ss:$8 sps:$4 sm:$0xff]  }
 0x34e   :  { %v4828_v8 = vpop.eup %4827 }
 0x34f   :  { %v974_v9 = vsel %vm958_vm2, %v4828_v8, 0.0 }
 0x350   :  { %975 = vadd.xlane.f32.xlu1 %v974_v9  ;;  %v4603_v9 = vld [vmem:[#allocation7 + $0x74] ss:$8 sps:$4 sm:$0xff]  }
 0x3d1   :  { %v1283_v10 = vpop.xlane.xlu0 %1282 }
 0x3d2   :  { %4829 = vrcp.f32 %v1283_v10  ;;  %v4601_v10 = vld [vmem:[#allocation7 + $0x70] ss:$8 sps:$4 sm:$0xff]  }
 0x3d5   :  { %v973_v11 = vpop.xlane.xlu1 %972 }
 0x3d6   :  { %4831 = vrcp.f32 %v973_v11  ;;  %v4606_v11 = vld [vmem:[#allocation7 + $0x84] ss:$8 sps:$4 sm:$0xff]  }
 0x3d9   :  { %v1286_v12 = vpop.xlane.xlu0 %1285 }
 0x3da   :  { %4833 = vrcp.f32 %v1286_v12  ;;  %v4604_v12 = vld [vmem:[#allocation7 + $0x80] ss:$8 sps:$4 sm:$0xff]  }
 0x3dc   :  { %v4830_v16 = vpop.eup %4829 }
 0x3dd   :  { %v1289_v17 = vmul.f32 %v4830_v16, %v4822_v1  ;;  %v976_v18 = vpop.xlane.xlu1 %975  ;;  %v4612_v16 = vld [vmem:[#allocation7 + $0xa4] ss:$8 sps:$4 sm:$0xff]  }
 0x3de   :  { %4835 = vrcp.f32 %v976_v18  ;;  %v4615_v18 = vld [vmem:[#allocation7 + $0xb4] ss:$8 sps:$4 sm:$0xff]  }
 0x3df   :  { %v1392_v15 = vpack.c.bf16 %v1289_v17, %v1289_v17  ;;  %v1291_v26 = vcombine.high %v1289_v17, %v5051_v38 }
 0x3e0   :  { %v4832_v20 = vpop.eup %4831 }
 0x3e1   :  { %v979_v21 = vmul.f32 %v4832_v20, %v4824_v4  ;;  %4385 = vmatmul.mubr.msk.bf16.vlgmr.msra.gmra.mrb[8].mxu1 %vm958_vm2, %v1392_v15  ;;  %v5299_v36 = vrot.slane %v1291_v26, %v987_v24  ;;  %v4592_v4 = vld [vmem:[#allocation7 + $0x40] ss:$8 sps:$4 sm:$0xff]   ;;  %v4613_v15 = vld [vmem:[#allocation7 + $0xb0] ss:$8 sps:$4 sm:$0xff]  }
 0x3e2   :  { %4389 = vmatpush3.bf16.msra.mxu1 %v5273_v29  ;;  %4390 = vmatprep.mubr.msk.bf16.mxu1 %vm5052_vm0, %v5051_v38  ;;  %v5294_v29 = vrot.slane %v1289_v17, %v987_v24  ;;  %v4610_v17 = vld [vmem:[#allocation7 + $0xa0] ss:$8 sps:$4 sm:$0xff]   ;;  %v4625_v26 = vld [vmem:[#allocation7 + $0xf0] ss:$8 sps:$4 sm:$0xff]  }
 0x3e3   :  { %v1088_v22 = vpack.c.bf16 %v979_v21, %v979_v21  ;;  %v981_v43 = vcombine.high %v979_v21, %v5051_v38  ;;  %v5313_v48 = vrot.slane %v979_v21, %v987_v24  ;;  %v4616_v20 = vld [vmem:[#allocation7 + $0xc0] ss:$8 sps:$4 sm:$0xff]   ;;  %v4621_v21 = vld [vmem:[#allocation7 + $0xd4] ss:$8 sps:$4 sm:$0xff]  }
 0x3e4   :  { %v4834_v25 = vpop.eup %4833 }
 0x3e5   :  { %v1290_v27 = vmul.f32 %v4834_v25, %v4826_v6  ;;  %4361 = vmatmul.mubr.msk.bf16.vlgmr.msra.gmra.mrb[20].mxu0 %vm958_vm2, %v1088_v22  ;;  %v5323_v57 = vrot.slane %v981_v43, %v987_v24  ;;  %v4595_v6 = vld [vmem:[#allocation7 + $0x50] ss:$8 sps:$4 sm:$0xff]   ;;  %v4627_v25 = vld [vmem:[#allocation7 + $0xf4] ss:$8 sps:$4 sm:$0xff]  }
 0x3e6   :  { %4365 = vmatpush3.bf16.msra.mxu0 %v5269_v28  ;;  %4366 = vmatprep.mubr.msk.bf16.mxu0 %vm5052_vm0, %v5051_v38  ;;  %v4619_v22 = vld [vmem:[#allocation7 + $0xd0] ss:$8 sps:$4 sm:$0xff]  }
 0x3e7   :  { %v1393_v30 = vpack.c.bf16 %v1290_v27, %v1290_v27  ;;  %1699 = vmatprep.subr.bf16.mxu0 %v4582_v23  ;;  %v5296_v31 = vrot.slane %v1290_v27, %v987_v24  ;;  %v1306_v32 = vcombine.high %v1290_v27, %v5051_v38  ;;  %v4624_v23 = vld [vmem:[#allocation7 + $0xe4] ss:$8 sps:$4 sm:$0xff]  }
 0x3e8   :  { %v4836_v33 = vpop.eup %4835 }
 0x3e9   :  { %v980_v37 = vmul.f32 %v4836_v33, %v4828_v8  ;;  %4391 = vmatmul.mubr.msk.bf16.vlgmr.msra.gmra.mrb[12].mxu1 %vm958_vm2, %v1393_v30  ;;  %v1322_v28 = vcombine.high %v5294_v29, %v5296_v31  ;;  %v1321_v40 = vcombine.low %v5294_v29, %v5296_v31  ;;  %v5306_v41 = vrot.slane %v1306_v32, %v987_v24  ;;  %v4598_v8 = vld [vmem:[#allocation7 + $0x60] ss:$8 sps:$4 sm:$0xff]  }
 0x3eb   :  { %v1089_v44 = vpack.c.bf16 %v980_v37, %v980_v37  ;;  %v1337_v46 = vcombine.low %v5299_v36, %v5306_v41  ;;  %v1338_v47 = vcombine.high %v5299_v36, %v5306_v41  ;;  %v5315_v50 = vrot.slane %v980_v37, %v987_v24 }
 0x3ec   :  { %v996_v52 = vcombine.high %v980_v37, %v5051_v38 }
 0x3ed   :  { %4367 = vmatmul.mubr.msk.bf16.vlgmr.msra.gmra.mrb[24].mxu0 %vm958_vm2, %v1089_v44  ;;  %v1011_v55 = vcombine.low %v5313_v48, %v5315_v50  ;;  %v1012_v56 = vcombine.high %v5313_v48, %v5315_v50  ;;  %v1352_v29 = vrot.slane %v1338_v47, %v5330_v61 }
 0x3ee   :  { %1700 = vmatpush1.bf16.msra.mxu0 %v4580_v42  ;;  %v5325_v58 = vrot.slane %v996_v52, %v987_v24  ;;  %v4622_v24 = vld [vmem:[#allocation7 + $0xe0] ss:$8 sps:$4 sm:$0xff]  }
 0x3ef   :  { %1701 = vmatprep.subr.bf16.mxu0 %v4585_v39  ;;  %v1356_v31 = vcombine.high %v1352_v29, %v5051_v38  ;;  %v1026_v41 = vrot.slane %v1012_v56, %v5330_v61 }
 0x3f0   :  { %v1027_v60 = vcombine.low %v5323_v57, %v5325_v58  ;;  %v1028_v62 = vcombine.high %v5323_v57, %v5325_v58 }
 0x3f1   :  { %v1044_v47 = vcombine.high %v1026_v41, %v5051_v38 }
 0x3f2   :  { %1702 = vmatpush1.bf16.msra.mxu0 %v4583_v54  ;;  %v5335_v1 = vrot.slane %v1028_v62, %v5330_v61 }
 0x3f3   :  { %1703 = vmatprep.subr.bf16.mxu0 %v4588_v59 }
 0x3f6   :  { %1704 = vmatpush1.bf16.msra.mxu0 %v4586_v63 }
 0x3f7   :  { %1705 = vmatprep.subr.bf16.mxu0 %v4591_v0 }
 0x3fa   :  { %1706 = vmatpush1.bf16.msra.mxu0 %v4589_v2  ;;  %v1527_v2 = vld [vmem:[#allocation8] sm:$0x3] }
 0x3fb   :  { %1707 = vmatprep.subr.bf16.mxu0 %v4594_v3  ;;  %v1532_v3 = vrot.slane %v1527_v2, %v5245_v49 }
 0x3fe   :  { %1708 = vmatpush1.bf16.msra.mxu0 %v4592_v4  ;;  %v1536_v4 = vrot.slane %v1527_v2, %v5248_v51  ;;  %v1837_v2 = vld [vmem:[#allocation10 + $0xc0] sm:$0xff] }
 0x3ff   :  { %1709 = vmatprep.subr.bf16.mxu0 %v4597_v5 }
 0x402   :  { %1710 = vmatpush1.bf16.msra.mxu0 %v4595_v6 }
 0x403   :  { %1711 = vmatprep.subr.bf16.mxu0 %v4600_v7 }
 0x406   :  { %1712 = vmatpush1.bf16.msra.mxu0 %v4598_v8 }
 0x407   :  { %1713 = vmatprep.subr.bf16.mxu0 %v4603_v9 }
 0x40a   :  { %1714 = vmatpush1.bf16.msra.mxu0 %v4601_v10  ;;  %v4845_v10 = vld [vmem:[#allocation2] sm:$0xff] }
 0x40b   :  { %1715 = vmatprep.subr.bf16.mxu0 %v4606_v11 }
 0x40e   :  { %1716 = vmatpush1.bf16.msra.mxu0 %v4604_v12 }
 0x40f   :  { %1717 = vmatprep.subr.bf16.mxu0 %v4609_v13 }
 0x412   :  { %1718 = vmatpush1.bf16.msra.mxu0 %v4607_v14  ;;  %v4846_v14 = vld [vmem:[#allocation2 + $0x8] sm:$0xff] }
 0x413   :  { %1719 = vmatprep.subr.bf16.mxu0 %v4612_v16 }
 0x416   :  { %1720 = vmatpush1.bf16.msra.mxu0 %v4610_v17 }
 0x417   :  { %1721 = vmatprep.subr.bf16.mxu0 %v4615_v18  ;;  %v4847_v18 = vld [vmem:[#allocation2 + $0x10] sm:$0xff] }
 0x41a   :  { %1722 = vmatpush1.bf16.msra.mxu0 %v4613_v15 }
 0x41b   :  { %1723 = vmatprep.subr.bf16.mxu0 %v4618_v19  ;;  %v4848_v19 = vld [vmem:[#allocation2 + $0x18] sm:$0xff] }
 0x41e   :  { %1724 = vmatpush1.bf16.msra.mxu0 %v4616_v20 }
 0x41f   :  { %1725 = vmatprep.subr.bf16.mxu0 %v4621_v21 }
 0x422   :  { %1726 = vmatpush1.bf16.msra.mxu0 %v4619_v22 }
 0x423   :  { %1727 = vmatprep.subr.bf16.mxu0 %v4624_v23  ;;  %v1813_v23 = vld [vmem:[#allocation10] sm:$0xff] }
 0x426   :  { %1728 = vmatpush1.bf16.msra.mxu0 %v4622_v24  ;;  %v1817_v24 = vld [vmem:[#allocation10 + $0x20] sm:$0xff] }
 0x427   :  { %1729 = vmatprep.subr.bf16.mxu0 %v4627_v25  ;;  %v1814_v25 = vld [vmem:[#allocation10 + $0x8] sm:$0xff] }
 0x42a   :  { %1730 = vmatpush1.bf16.msra.mxu0 %v4625_v26  ;;  %v4074_v26 = vcombine.low %v1813_v23, %v1817_v24 }
 0x4b4   :  { %v1434_v27 = vpop.f32.mrb[8].mxu1 }
 0x4b5   :  { %v4386_v30 = vpop.f32.mrb[9].mxu1 }
 0x4b6   :  { %v1437_v32 = vpop.f32.mrb[10].mxu1  ;;  %v1818_v30 = vld [vmem:[#allocation10 + $0x28] sm:$0xff] }
 0x4b7   :  { %v4387_v33 = vpop.f32.mrb[11].mxu1  ;;  %v1821_v32 = vld [vmem:[#allocation10 + $0x40] sm:$0xff] }
 0x4b8   :  { %v1131_v34 = vpop.f32.mrb[20].mxu0  ;;  %v1825_v33 = vld [vmem:[#allocation10 + $0x60] sm:$0xff] }
 0x4b9   :  { %v4362_v35 = vpop.f32.mrb[21].mxu0 }
 0x4ba   :  { %v1134_v37 = vpop.f32.mrb[22].mxu0  ;;  %v4077_v35 = vcombine.high %v1814_v25, %v1818_v30 }
 0x4bb   :  { %v4363_v42 = vpop.f32.mrb[23].mxu0  ;;  %v4083_v37 = vcombine.high %v1821_v32, %v1825_v33 }
 0x4bc   :  { %v1480_v43 = vpop.f32.mrb[12].mxu1  ;;  %v1822_v42 = vld [vmem:[#allocation10 + $0x48] sm:$0xff]  ;;  %2624 = vmatprep.subr.bf16.mxu0 %v4077_v35 }
 0x4bd   :  { %v1494_v44 = vpack.c.bf16 %v1480_v43, %v1434_v27  ;;  %v4392_v39 = vpop.f32.mrb[13].mxu1  ;;  %v4075_v27 = vcombine.high %v1813_v23, %v1817_v24  ;;  %v1826_v43 = vld [vmem:[#allocation10 + $0x68] sm:$0xff]  ;;  %v1857_v23 = vld [vmem:[#allocation10 + $0x160] sm:$0xff] }
 0x4be   :  { %v1483_v52 = vpop.f32.mrb[14].mxu1  ;;  %v4085_v39 = vcombine.high %v1822_v42, %v1826_v43  ;;  %v1854_v24 = vld [vmem:[#allocation10 + $0x148] sm:$0xff] }
 0x4bf   :  { %v4393_v53 = vpop.f32.mrb[15].mxu1  ;;  %1731 = vmatprep.mubr.bf16.mxu0 %v1494_v44  ;;  %v1829_v44 = vld [vmem:[#allocation10 + $0x80] sm:$0xff]  ;;  %2581 = vmatprep.subr.bf16.mxu1 %v4075_v27  ;;  %v1862_v35 = vld [vmem:[#allocation10 + $0x188] sm:$0xff] }
 0x4c0   :  { %v1177_v54 = vpop.f32.mrb[24].mxu0  ;;  %v1833_v52 = vld [vmem:[#allocation10 + $0xa0] sm:$0xff]  ;;  %v1830_v53 = vld [vmem:[#allocation10 + $0x88] sm:$0xff]  ;;  %2582 = vmatpush1.bf16.msra.mxu1 %v4074_v26 }
 0x4c1   :  { %v1493_v59 = vpack.c.bf16 %v1177_v54, %v1131_v34  ;;  %v4368_v62 = vpop.f32.mrb[25].mxu0  ;;  %v4076_v34 = vcombine.low %v1814_v25, %v1818_v30  ;;  %v1834_v54 = vld [vmem:[#allocation10 + $0xa8] sm:$0xff]  ;;  %2583 = vmatprep.subr.bf16.mxu1 %v4083_v37 }
 0x4c2   :  { %v1180_v63 = vpop.f32.mrb[26].mxu0  ;;  %v4084_v62 = vcombine.low %v1822_v42, %v1826_v43  ;;  %v1858_v25 = vld [vmem:[#allocation10 + $0x168] sm:$0xff] }
 0x4c3   :  { %v4369_v0 = vpop.f32.mrb[27].mxu0  ;;  %1732 = vmatmul.mubr.bf16.vlgmr.msra.gmra.mrb[28].mxu0 %v1493_v59  ;;  %v4082_v59 = vcombine.low %v1821_v32, %v1825_v33  ;;  %v4091_v63 = vcombine.high %v1829_v44, %v1833_v52  ;;  %v4117_v32 = vcombine.high %v1854_v24, %v1858_v25  ;;  %v1861_v33 = vld [vmem:[#allocation10 + $0x180] sm:$0xff]  ;;  %v1866_v37 = vld [vmem:[#allocation10 + $0x1a8] sm:$0xff]  ;;  %v4116_v43 = vcombine.low %v1854_v24, %v1858_v25 }
 0x4c4   :  { %2625 = vmatpush1.bf16.msra.mxu0 %v4076_v34  ;;  %v4093_v0 = vcombine.high %v1830_v53, %v1834_v54  ;;  %v1865_v34 = vld [vmem:[#allocation10 + $0x1a0] sm:$0xff] }
 0x4c5   :  { %2626 = vmatprep.subr.bf16.mxu0 %v4085_v39  ;;  %2584 = vmatpush1.bf16.msra.mxu1 %v4082_v59  ;;  %v4125_v39 = vcombine.high %v1862_v35, %v1866_v37  ;;  %v1874_v59 = vld [vmem:[#allocation10 + $0x1e8] sm:$0xff] }
 0x4c6   :  { %2585 = vmatprep.subr.bf16.mxu1 %v4091_v63  ;;  %v4124_v63 = vcombine.low %v1862_v35, %v1866_v37 }
 0x4c8   :  { %2627 = vmatpush1.bf16.msra.mxu0 %v4084_v62  ;;  %v4122_v62 = vcombine.low %v1861_v33, %v1865_v34 }
 0x4c9   :  { %2628 = vmatprep.subr.bf16.mxu0 %v4093_v0 }
 0x596   :  { %v1733_v5 = vpop.f32.mrb[28].mxu0 }
 0x597   :  { %v1734_v6 = vadd.f32 %v1733_v5, %v1532_v3  ;;  %v1735_v7 = vpop.f32.mrb[29].mxu0  ;;  %v1842_v5 = vld [vmem:[#allocation10 + $0xe8] sm:$0xff] }
 0x598   :  { %v1736_v8 = vadd.f32 %v1735_v7, %v1536_v4  ;;  %v1737_v9 = vpop.f32.mrb[30].mxu0  ;;  %v4092_v7 = vcombine.low %v1830_v53, %v1834_v54  ;;  %v1873_v53 = vld [vmem:[#allocation10 + $0x1e0] sm:$0xff]  ;;  %v1870_v54 = vld [vmem:[#allocation10 + $0x1c8] sm:$0xff] }
 0x599   :  { %v5339_v11 = vadd.f32 %v4845_v10, %v1734_v6  ;;  %v1738_v12 = vadd.f32 %v1737_v9, %v1532_v3  ;;  %v1739_v13 = vpop.f32.mrb[31].mxu0  ;;  %v1841_v3 = vld [vmem:[#allocation10 + $0xe0] sm:$0xff]  ;;  %v4090_v6 = vcombine.low %v1829_v44, %v1833_v52  ;;  %v4123_v44 = vcombine.high %v1861_v33, %v1865_v34 }
 0x59a   :  { %v5341_v16 = vadd.f32 %v4846_v14, %v1736_v8  ;;  %v1740_v17 = vadd.f32 %v1739_v13, %v1536_v4  ;;  %v1838_v4 = vld [vmem:[#allocation10 + $0xc8] sm:$0xff]  ;;  %v4099_v8 = vcombine.high %v1837_v2, %v1841_v3  ;;  %v1845_v10 = vld [vmem:[#allocation10 + $0x100] sm:$0xff]  ;;  %2629 = vmatpush1.bf16.msra.mxu0 %v4092_v7 }
 0x59b   :  { %v5343_v15 = vadd.f32 %v4847_v18, %v1738_v12  ;;  %v4101_v9 = vcombine.high %v1838_v4, %v1842_v5  ;;  %v1849_v12 = vld [vmem:[#allocation10 + $0x120] sm:$0xff]  ;;  %v1846_v13 = vld [vmem:[#allocation10 + $0x108] sm:$0xff]  ;;  %2586 = vmatpush1.bf16.msra.mxu1 %v4090_v6  ;;  %v4100_v18 = vcombine.low %v1838_v4, %v1842_v5 }
 0x59c   :  { %v5345_v20 = vadd.f32 %v4848_v19, %v1740_v17  ;;  %v1748_v21 = vadd.f32 %v5341_v16, %v5339_v11  ;;  %v1850_v14 = vld [vmem:[#allocation10 + $0x128] sm:$0xff]  ;;  %v4098_v17 = vcombine.low %v1837_v2, %v1841_v3  ;;  %2587 = vmatprep.subr.bf16.mxu1 %v4099_v8  ;;  %v4107_v19 = vcombine.high %v1845_v10, %v1849_v12  ;;  %v1869_v52 = vld [vmem:[#allocation10 + $0x1c0] sm:$0xff] }
 0x59d   :  { %2630 = vmatprep.subr.bf16.mxu0 %v4101_v9  ;;  %v4106_v26 = vcombine.low %v1845_v10, %v1849_v12  ;;  %v4108_v27 = vcombine.low %v1846_v13, %v1850_v14  ;;  %v4131_v0 = vcombine.high %v1869_v52, %v1873_v53  ;;  %v4133_v2 = vcombine.high %v1870_v54, %v1874_v59  ;;  %v1877_v3 = vld [vmem:[#allocation10 + $0x200] sm:$0xff]  ;;  %v1878_v5 = vld [vmem:[#allocation10 + $0x208] sm:$0xff] }
 0x59e   :  { %1749 = vadd.xlane.f32.xlu0 %v1748_v21  ;;  %v1751_v22 = vadd.f32 %v5345_v20, %v5343_v15  ;;  %v4109_v21 = vcombine.high %v1846_v13, %v1850_v14  ;;  %2631 = vmatpush1.bf16.msra.mxu0 %v4100_v18  ;;  %v1881_v4 = vld [vmem:[#allocation10 + $0x220] sm:$0xff]  ;;  %v1882_v6 = vld [vmem:[#allocation10 + $0x228] sm:$0xff]  ;;  %v4130_v7 = vcombine.low %v1869_v52, %v1873_v53 }
 0x59f   :  { %2588 = vmatpush1.bf16.msra.mxu1 %v4098_v17  ;;  %v4132_v8 = vcombine.low %v1870_v54, %v1874_v59  ;;  %v4139_v9 = vcombine.high %v1877_v3, %v1881_v4  ;;  %v4141_v10 = vcombine.high %v1878_v5, %v1882_v6  ;;  %v1885_v12 = vld [vmem:[#allocation10 + $0x240] sm:$0xff]  ;;  %v1886_v14 = vld [vmem:[#allocation10 + $0x248] sm:$0xff]  ;;  %v4138_v18 = vcombine.low %v1877_v3, %v1881_v4 }
 0x5a0   :  { %1752 = vadd.xlane.f32.xlu1 %v1751_v22  ;;  %v1853_v22 = vld [vmem:[#allocation10 + $0x140] sm:$0xff]  ;;  %2589 = vmatprep.subr.bf16.mxu1 %v4107_v19  ;;  %v1890_v17 = vld [vmem:[#allocation10 + $0x268] sm:$0xff]  ;;  %v4140_v19 = vcombine.low %v1878_v5, %v1882_v6 }
 0x5a1   :  { %v4115_v30 = vcombine.high %v1853_v22, %v1857_v23  ;;  %2632 = vmatprep.subr.bf16.mxu0 %v4109_v21  ;;  %v4114_v42 = vcombine.low %v1853_v22, %v1857_v23  ;;  %v1889_v13 = vld [vmem:[#allocation10 + $0x260] sm:$0xff]  ;;  %v4149_v22 = vcombine.high %v1886_v14, %v1890_v17  ;;  %v4148_v24 = vcombine.low %v1886_v14, %v1890_v17  ;;  %v1898_v53 = vld [vmem:[#allocation10 + $0x2a8] sm:$0xff] }
 0x5a2   :  { %2633 = vmatpush1.bf16.msra.mxu0 %v4108_v27  ;;  %v4147_v21 = vcombine.high %v1885_v12, %v1889_v13  ;;  %v4146_v23 = vcombine.low %v1885_v12, %v1889_v13  ;;  %v1906_v4 = vld [vmem:[#allocation10 + $0x2e8] sm:$0xff] }
 0x5a3   :  { %2590 = vmatpush1.bf16.msra.mxu1 %v4106_v26  ;;  %2634 = vmatprep.subr.bf16.mxu0 %v4117_v32  ;;  %v1914_v13 = vld [vmem:[#allocation10 + $0x328] sm:$0xff] }
 0x5a4   :  { %2591 = vmatprep.subr.bf16.mxu1 %v4115_v30 }
 0x5a6   :  { %2635 = vmatpush1.bf16.msra.mxu0 %v4116_v43 }
 0x5a7   :  { %2592 = vmatpush1.bf16.msra.mxu1 %v4114_v42  ;;  %2636 = vmatprep.subr.bf16.mxu0 %v4125_v39  ;;  %v1897_v39 = vld [vmem:[#allocation10 + $0x2a0] sm:$0xff] }
 0x5a8   :  { %2593 = vmatprep.subr.bf16.mxu1 %v4123_v44 }
 0x5aa   :  { %2637 = vmatpush1.bf16.msra.mxu0 %v4124_v63  ;;  %v1901_v63 = vld [vmem:[#allocation10 + $0x2c0] sm:$0xff] }
 0x5ab   :  { %2594 = vmatpush1.bf16.msra.mxu1 %v4122_v62  ;;  %2638 = vmatprep.subr.bf16.mxu0 %v4133_v2  ;;  %v1902_v2 = vld [vmem:[#allocation10 + $0x2c8] sm:$0xff] }
 0x5ac   :  { %2595 = vmatprep.subr.bf16.mxu1 %v4131_v0  ;;  %v1905_v0 = vld [vmem:[#allocation10 + $0x2e0] sm:$0xff]  ;;  %v4164_v6 = vcombine.low %v1902_v2, %v1906_v4 }
 0x5ad   :  { %v4163_v3 = vcombine.high %v1901_v63, %v1905_v0  ;;  %v4162_v5 = vcombine.low %v1901_v63, %v1905_v0  ;;  %v1815_v0 = vld [vmem:[#allocation10 + $0x10] sm:$0xff] }
 0x5ae   :  { %2639 = vmatpush1.bf16.msra.mxu0 %v4132_v8  ;;  %v1909_v8 = vld [vmem:[#allocation10 + $0x300] sm:$0xff] }
 0x5af   :  { %2596 = vmatpush1.bf16.msra.mxu1 %v4130_v7  ;;  %2640 = vmatprep.subr.bf16.mxu0 %v4141_v10  ;;  %v4165_v7 = vcombine.high %v1902_v2, %v1906_v4  ;;  %v1910_v10 = vld [vmem:[#allocation10 + $0x308] sm:$0xff]  ;;  %v1819_v2 = vld [vmem:[#allocation10 + $0x30] sm:$0xff] }
 0x5b0   :  { %2597 = vmatprep.subr.bf16.mxu1 %v4139_v9  ;;  %v1913_v9 = vld [vmem:[#allocation10 + $0x320] sm:$0xff]  ;;  %v4172_v17 = vcombine.low %v1910_v10, %v1914_v13  ;;  %v4079_v4 = vcombine.high %v1815_v0, %v1819_v2 }
 0x5b1   :  { %v4171_v12 = vcombine.high %v1909_v8, %v1913_v9  ;;  %v4170_v14 = vcombine.low %v1909_v8, %v1913_v9 }
 0x5b2   :  { %2641 = vmatpush1.bf16.msra.mxu0 %v4140_v19  ;;  %v1917_v19 = vld [vmem:[#allocation10 + $0x340] sm:$0xff] }
 0x5b3   :  { %2598 = vmatpush1.bf16.msra.mxu1 %v4138_v18  ;;  %2642 = vmatprep.subr.bf16.mxu0 %v4149_v22  ;;  %v4173_v18 = vcombine.high %v1910_v10, %v1914_v13  ;;  %v1918_v22 = vld [vmem:[#allocation10 + $0x348] sm:$0xff] }
 0x5b4   :  { %2599 = vmatprep.subr.bf16.mxu1 %v4147_v21  ;;  %v1921_v21 = vld [vmem:[#allocation10 + $0x360] sm:$0xff] }
 0x5b6   :  { %2643 = vmatpush1.bf16.msra.mxu0 %v4148_v24  ;;  %v1922_v24 = vld [vmem:[#allocation10 + $0x368] sm:$0xff] }
 0x5b7   :  { %2600 = vmatpush1.bf16.msra.mxu1 %v4146_v23  ;;  %v4179_v23 = vcombine.high %v1917_v19, %v1921_v21 }
 0x62b   :  { %v1750_v25 = vpop.xlane.xlu0 %1749 }
 0x62c   :  { %v1755_v26 = vmul.f32 0.00390625, %v1750_v25  ;;  %v4178_v25 = vcombine.low %v1917_v19, %v1921_v21  ;;  %v1747_v19 = vld [vmem:[%s5588_s6] sm:$0x3] }
 0x62d   :  { %v1753_v27 = vpop.xlane.xlu1 %1752 }
 0x62e   :  { %v5352_v30 = vsub.f32 %v5339_v11, %v1755_v26  ;;  %v5355_v32 = vsub.f32 %v5341_v16, %v1755_v26  ;;  %v1756_v33 = vmul.f32 0.00390625, %v1753_v27  ;;  %v4180_v26 = vcombine.low %v1918_v22, %v1922_v24 }
 0x62f   :  { %v4181_v27 = vcombine.high %v1918_v22, %v1922_v24 }
 0x630   :  { %v5358_v34 = vsub.f32 %v5343_v15, %v1756_v33  ;;  %v5361_v35 = vsub.f32 %v5345_v20, %v1756_v33  ;;  %v1761_v37 = vmul.f32 %v5352_v30, %v5352_v30  ;;  %v1762_v42 = vmul.f32 %v5355_v32, %v5355_v32  ;;  %v1893_v15 = vld [vmem:[#allocation10 + $0x280] sm:$0xff]  ;;  %v1894_v20 = vld [vmem:[#allocation10 + $0x288] sm:$0xff] }
 0x631   :  { %v4155_v52 = vcombine.high %v1893_v15, %v1897_v39  ;;  %v4154_v54 = vcombine.low %v1893_v15, %v1897_v39  ;;  %v4156_v59 = vcombine.low %v1894_v20, %v1898_v53  ;;  %v4157_v62 = vcombine.high %v1894_v20, %v1898_v53  ;;  %v1925_v33 = vld [vmem:[#allocation10 + $0x380] sm:$0xff] }
 0x632   :  { %v1765_v43 = vadd.f32 %v1762_v42, %v1761_v37  ;;  %v1763_v11 = vmul.f32 %v5358_v34, %v5358_v34  ;;  %v1764_v16 = vmul.f32 %v5361_v35, %v5361_v35  ;;  %v1929_v37 = vld [vmem:[#allocation10 + $0x3a0] sm:$0xff]  ;;  %v1926_v42 = vld [vmem:[#allocation10 + $0x388] sm:$0xff] }
 0x633   :  { %2601 = vmatprep.subr.bf16.mxu1 %v4155_v52  ;;  %2644 = vmatprep.subr.bf16.mxu0 %v4157_v62  ;;  %v1933_v39 = vld [vmem:[#allocation10 + $0x3c0] sm:$0xff]  ;;  %v1934_v52 = vld [vmem:[#allocation10 + $0x3c8] sm:$0xff] }
 0x634   :  { %1766 = vadd.xlane.f32.xlu0 %v1765_v43  ;;  %v1768_v44 = vadd.f32 %v1764_v16, %v1763_v11  ;;  %2602 = vmatpush1.bf16.msra.mxu1 %v4154_v54  ;;  %v4187_v43 = vcombine.high %v1925_v33, %v1929_v37  ;;  %v1930_v11 = vld [vmem:[#allocation10 + $0x3a8] sm:$0xff]  ;;  %v4186_v16 = vcombine.low %v1925_v33, %v1929_v37  ;;  %v1937_v20 = vld [vmem:[#allocation10 + $0x3e0] sm:$0xff] }
 0x635   :  { %2645 = vmatpush1.bf16.msra.mxu0 %v4156_v59  ;;  %2603 = vmatprep.subr.bf16.mxu1 %v4163_v3  ;;  %v4189_v15 = vcombine.high %v1926_v42, %v1930_v11  ;;  %v4195_v53 = vcombine.high %v1933_v39, %v1937_v20  ;;  %v1938_v54 = vld [vmem:[#allocation10 + $0x3e8] sm:$0xff]  ;;  %v4194_v59 = vcombine.low %v1933_v39, %v1937_v20  ;;  %v1816_v3 = vld [vmem:[#allocation10 + $0x18] sm:$0xff]  ;;  %v1823_v20 = vld [vmem:[#allocation10 + $0x50] sm:$0xff] }
 0x636   :  { %1769 = vadd.xlane.f32.xlu1 %v1768_v44  ;;  %2646 = vmatprep.subr.bf16.mxu0 %v4165_v7  ;;  %v4188_v44 = vcombine.low %v1926_v42, %v1930_v11  ;;  %v4197_v62 = vcombine.high %v1934_v52, %v1938_v54  ;;  %v4196_v63 = vcombine.low %v1934_v52, %v1938_v54  ;;  %v1827_v52 = vld [vmem:[#allocation10 + $0x70] sm:$0xff]  ;;  %v1828_v54 = vld [vmem:[#allocation10 + $0x78] sm:$0xff] }
 0x637   :  { %v1800_v33 = vrot.slane %v1747_v19, %v5245_v49 }
 0x638   :  { %2604 = vmatpush1.bf16.msra.mxu1 %v4162_v5  ;;  %v1820_v5 = vld [vmem:[#allocation10 + $0x38] sm:$0xff] }
 0x639   :  { %2647 = vmatpush1.bf16.msra.mxu0 %v4164_v6  ;;  %2605 = vmatprep.subr.bf16.mxu1 %v4171_v12  ;;  %v4078_v6 = vcombine.low %v1815_v0, %v1819_v2  ;;  %v4080_v7 = vcombine.low %v1816_v3, %v1820_v5  ;;  %v4081_v8 = vcombine.high %v1816_v3, %v1820_v5  ;;  %v1835_v0 = vld [vmem:[#allocation10 + $0xb0] sm:$0xff]  ;;  %v1832_v2 = vld [vmem:[#allocation10 + $0x98] sm:$0xff] }
 0x63a   :  { %2648 = vmatprep.subr.bf16.mxu0 %v4173_v18  ;;  %v1746_v18 = vld [vmem:[%s5587_s5] sm:$0x3] }
 0x63b   :  { %v1789_v21 = vrot.slane %v1746_v18, %v5248_v51  ;;  %v1785_v22 = vrot.slane %v1746_v18, %v5245_v49  ;;  %v1836_v3 = vld [vmem:[#allocation10 + $0xb8] sm:$0xff] }
 0x63c   :  { %2606 = vmatpush1.bf16.msra.mxu1 %v4170_v14  ;;  %v4096_v18 = vcombine.low %v1832_v2, %v1836_v3 }
 0x63d   :  { %2649 = vmatpush1.bf16.msra.mxu0 %v4172_v17  ;;  %2607 = vmatprep.subr.bf16.mxu1 %v4179_v23 }
 0x63e   :  { %2650 = vmatprep.subr.bf16.mxu0 %v4181_v27  ;;  %v1804_v27 = vrot.slane %v1747_v19, %v5248_v51  ;;  %v1847_v19 = vld [vmem:[#allocation10 + $0x110] sm:$0xff] }
 0x640   :  { %2608 = vmatpush1.bf16.msra.mxu1 %v4178_v25 }
 0x641   :  { %2651 = vmatpush1.bf16.msra.mxu0 %v4180_v26  ;;  %2609 = vmatprep.subr.bf16.mxu1 %v4187_v43 }
 0x642   :  { %2652 = vmatprep.subr.bf16.mxu0 %v4189_v15 }
 0x644   :  { %2610 = vmatpush1.bf16.msra.mxu1 %v4186_v16 }
 0x645   :  { %2653 = vmatpush1.bf16.msra.mxu0 %v4188_v44  ;;  %2611 = vmatprep.subr.bf16.mxu1 %v4195_v53  ;;  %v1824_v53 = vld [vmem:[#allocation10 + $0x58] sm:$0xff] }
 0x646   :  { %2654 = vmatprep.subr.bf16.mxu0 %v4197_v62  ;;  %v4087_v62 = vcombine.high %v1823_v20, %v1827_v52  ;;  %v4088_v5 = vcombine.low %v1824_v53, %v1828_v54 }
 0x648   :  { %2612 = vmatpush1.bf16.msra.mxu1 %v4194_v59  ;;  %v1831_v59 = vld [vmem:[#allocation10 + $0x90] sm:$0xff] }
 0x649   :  { %2655 = vmatpush1.bf16.msra.mxu0 %v4196_v63  ;;  %2667 = vmatprep.subr.bf16.mxu1 %v4079_v4  ;;  %v4089_v63 = vcombine.high %v1824_v53, %v1828_v54  ;;  %v4086_v4 = vcombine.low %v1823_v20, %v1827_v52  ;;  %v1863_v52 = vld [vmem:[#allocation10 + $0x190] sm:$0xff]  ;;  %v1864_v54 = vld [vmem:[#allocation10 + $0x198] sm:$0xff] }
 0x64a   :  { %2710 = vmatprep.subr.bf16.mxu0 %v4081_v8  ;;  %v4095_v8 = vcombine.high %v1831_v59, %v1835_v0  ;;  %v1867_v53 = vld [vmem:[#allocation10 + $0x1b0] sm:$0xff] }
 0x6c1   :  { %v1767_v9 = vpop.xlane.xlu0 %1766 }
 0x6c2   :  { %v1771_v10 = vmul.f32 0.00390625, %v1767_v9  ;;  %v4097_v9 = vcombine.high %v1832_v2, %v1836_v3  ;;  %v1871_v2 = vld [vmem:[#allocation10 + $0x1d0] sm:$0xff] }
 0x6c3   :  { %v1770_v12 = vpop.xlane.xlu1 %1769  ;;  %v1875_v3 = vld [vmem:[#allocation10 + $0x1f0] sm:$0xff] }
 0x6c4   :  { %v1773_v13 = vadd.f32 1e-06, %v1771_v10  ;;  %v1772_v14 = vmul.f32 0.00390625, %v1770_v12  ;;  %v1839_v10 = vld [vmem:[#allocation10 + $0xd0] sm:$0xff] }
 0x6c5   :  { %v1843_v12 = vld [vmem:[#allocation10 + $0xf0] sm:$0xff] }
 0x6c6   :  { %4837 = vrsqrt.f32 %v1773_v13  ;;  %v1774_v17 = vadd.f32 1e-06, %v1772_v14  ;;  %v1840_v13 = vld [vmem:[#allocation10 + $0xd8] sm:$0xff] }
 0x6c7   :  { %v1844_v14 = vld [vmem:[#allocation10 + $0xf8] sm:$0xff] }
 0x6c8   :  { %4839 = vrsqrt.f32 %v1774_v17  ;;  %v4094_v17 = vcombine.low %v1831_v59, %v1835_v0 }
 0x6d0   :  { %v4838_v23 = vpop.eup %4837 }
 0x6d1   :  { %v1777_v24 = vmul.f32 %v4838_v23, %v5352_v30  ;;  %v1778_v25 = vmul.f32 %v4838_v23, %v5355_v32  ;;  %v1852_v23 = vld [vmem:[#allocation10 + $0x138] sm:$0xff] }
 0x6d2   :  { %v4840_v26 = vpop.eup %4839 }
 0x6d3   :  { %v1779_v37 = vmul.f32 %v4840_v26, %v5358_v34  ;;  %v1780_v42 = vmul.f32 %v4840_v26, %v5361_v35  ;;  %v1793_v43 = vmul.f32 %v1789_v21, %v1778_v25  ;;  %v1792_v11 = vmul.f32 %v1785_v22, %v1777_v24 }
 0x6d4   :  { %v4102_v24 = vcombine.low %v1839_v10, %v1843_v12  ;;  %v4104_v25 = vcombine.low %v1840_v13, %v1844_v14 }
 0x6d5   :  { %v1795_v16 = vmul.f32 %v1789_v21, %v1780_v42  ;;  %v1794_v44 = vmul.f32 %v1785_v22, %v1779_v37  ;;  %v5385_v15 = vadd.f32 %v1804_v27, %v1793_v43  ;;  %v5389_v30 = vadd.f32 %v1800_v33, %v1792_v11  ;;  %v1851_v21 = vld [vmem:[#allocation10 + $0x130] sm:$0xff]  ;;  %v1848_v22 = vld [vmem:[#allocation10 + $0x118] sm:$0xff] }
 0x6d6   :  { %v4111_v26 = vcombine.high %v1847_v19, %v1851_v21  ;;  %v1859_v37 = vld [vmem:[#allocation10 + $0x170] sm:$0xff]  ;;  %v1856_v42 = vld [vmem:[#allocation10 + $0x158] sm:$0xff]  ;;  %v4110_v11 = vcombine.low %v1847_v19, %v1851_v21 }
 0x6d7   :  { %v5387_v39 = vadd.f32 %v1804_v27, %v1795_v16  ;;  %v5391_v32 = vadd.f32 %v1800_v33, %v1794_v44  ;;  %v4113_v27 = vcombine.high %v1848_v22, %v1852_v23  ;;  %v1855_v33 = vld [vmem:[#allocation10 + $0x150] sm:$0xff]  ;;  %v1860_v43 = vld [vmem:[#allocation10 + $0x178] sm:$0xff]  ;;  %v4112_v16 = vcombine.low %v1848_v22, %v1852_v23 }
 0x6d8   :  { %v4119_v44 = vcombine.high %v1855_v33, %v1859_v37  ;;  %v4121_v20 = vcombine.high %v1856_v42, %v1860_v43  ;;  %v4118_v59 = vcombine.low %v1855_v33, %v1859_v37  ;;  %v1887_v22 = vld [vmem:[#allocation10 + $0x250] sm:$0xff] }
 0x6d9   :  { %v1812_v34 = vpack.c.bf16 %v5387_v39, %v5385_v15  ;;  %v5397_v35 = vpack.c.bf16 %v5391_v32, %v5389_v30  ;;  %v1891_v23 = vld [vmem:[#allocation10 + $0x270] sm:$0xff] }
 0x6da   :  { %v4151_v33 = vcombine.high %v1887_v22, %v1891_v23 }
 0x6db   :  { %2613 = vmatprep.mubr.bf16.mxu1 %v1812_v34  ;;  %2656 = vmatprep.mubr.bf16.mxu0 %v1812_v34 }
 0x6dc   :  { %2614 = vmatmul.mubr.bf16.vlgmr.msra.gmra.mrb[16].mxu1 %v5397_v35  ;;  %2657 = vmatmul.mubr.bf16.vlgmr.msra.gmra.mrb[32].mxu0 %v5397_v35 }
 0x6dd   :  { %2668 = vmatpush1.bf16.msra.mxu1 %v4078_v6  ;;  %2711 = vmatpush1.bf16.msra.mxu0 %v4080_v7  ;;  %v4103_v6 = vcombine.high %v1839_v10, %v1843_v12  ;;  %v4105_v7 = vcombine.high %v1840_v13, %v1844_v14  ;;  %v4135_v10 = vcombine.high %v1871_v2, %v1875_v3  ;;  %v1879_v13 = vld [vmem:[#allocation10 + $0x210] sm:$0xff] }
 0x6de   :  { %2699 = vmatprep.mubr.bf16.mxu1 %v1812_v34  ;;  %2742 = vmatprep.mubr.bf16.mxu0 %v1812_v34  ;;  %v1868_v34 = vld [vmem:[#allocation10 + $0x1b8] sm:$0xff]  ;;  %v1883_v14 = vld [vmem:[#allocation10 + $0x230] sm:$0xff] }
 0x6df   :  { %2669 = vmatprep.subr.bf16.mxu1 %v4087_v62  ;;  %2712 = vmatprep.subr.bf16.mxu0 %v4089_v63  ;;  %v4120_v62 = vcombine.low %v1856_v42, %v1860_v43  ;;  %v4127_v63 = vcombine.high %v1863_v52, %v1867_v53  ;;  %v4129_v0 = vcombine.high %v1864_v54, %v1868_v34  ;;  %v1895_v42 = vld [vmem:[#allocation10 + $0x290] sm:$0xff] }
 0x6e0   :  { %v4143_v19 = vcombine.high %v1879_v13, %v1883_v14  ;;  %v1899_v43 = vld [vmem:[#allocation10 + $0x2b0] sm:$0xff] }
 0x6e1   :  { %2670 = vmatpush1.bf16.msra.mxu1 %v4086_v4  ;;  %2713 = vmatpush1.bf16.msra.mxu0 %v4088_v5  ;;  %v1872_v4 = vld [vmem:[#allocation10 + $0x1d8] sm:$0xff] }
 0x6e2   :  { %2671 = vmatprep.subr.bf16.mxu1 %v4095_v8  ;;  %2714 = vmatprep.subr.bf16.mxu0 %v4097_v9  ;;  %v1876_v5 = vld [vmem:[#allocation10 + $0x1f8] sm:$0xff]  ;;  %v4126_v8 = vcombine.low %v1863_v52, %v1867_v53  ;;  %v4128_v9 = vcombine.low %v1864_v54, %v1868_v34  ;;  %v4159_v52 = vcombine.high %v1895_v42, %v1899_v43  ;;  %v1903_v54 = vld [vmem:[#allocation10 + $0x2d0] sm:$0xff] }
 0x6e3   :  { %v4137_v12 = vcombine.high %v1872_v4, %v1876_v5  ;;  %v1907_v34 = vld [vmem:[#allocation10 + $0x2f0] sm:$0xff] }
 0x6e5   :  { %2672 = vmatpush1.bf16.msra.mxu1 %v4094_v17  ;;  %2715 = vmatpush1.bf16.msra.mxu0 %v4096_v18  ;;  %v1880_v17 = vld [vmem:[#allocation10 + $0x218] sm:$0xff] }
 0x6e6   :  { %2673 = vmatprep.subr.bf16.mxu1 %v4103_v6  ;;  %2716 = vmatprep.subr.bf16.mxu0 %v4105_v7  ;;  %v1884_v18 = vld [vmem:[#allocation10 + $0x238] sm:$0xff]  ;;  %v4134_v6 = vcombine.low %v1871_v2, %v1875_v3  ;;  %v4136_v7 = vcombine.low %v1872_v4, %v1876_v5  ;;  %v4167_v2 = vcombine.high %v1903_v54, %v1907_v34  ;;  %v1911_v4 = vld [vmem:[#allocation10 + $0x310] sm:$0xff] }
 0x6e7   :  { %v4145_v21 = vcombine.high %v1880_v17, %v1884_v18  ;;  %v1915_v5 = vld [vmem:[#allocation10 + $0x330] sm:$0xff] }
 0x6e9   :  { %2674 = vmatpush1.bf16.msra.mxu1 %v4102_v24  ;;  %2717 = vmatpush1.bf16.msra.mxu0 %v4104_v25  ;;  %v1888_v24 = vld [vmem:[#allocation10 + $0x258] sm:$0xff] }
 0x6ea   :  { %2675 = vmatprep.subr.bf16.mxu1 %v4111_v26  ;;  %2718 = vmatprep.subr.bf16.mxu0 %v4113_v27  ;;  %v1892_v25 = vld [vmem:[#allocation10 + $0x278] sm:$0xff]  ;;  %v4142_v26 = vcombine.low %v1879_v13, %v1883_v14  ;;  %v4144_v27 = vcombine.low %v1880_v17, %v1884_v18  ;;  %v4175_v13 = vcombine.high %v1911_v4, %v1915_v5  ;;  %v1919_v17 = vld [vmem:[#allocation10 + $0x350] sm:$0xff] }
 0x6eb   :  { %v4153_v37 = vcombine.high %v1888_v24, %v1892_v25  ;;  %v1923_v18 = vld [vmem:[#allocation10 + $0x370] sm:$0xff] }
 0x6ed   :  { %2676 = vmatpush1.bf16.msra.mxu1 %v4110_v11  ;;  %2719 = vmatpush1.bf16.msra.mxu0 %v4112_v16  ;;  %v1896_v11 = vld [vmem:[#allocation10 + $0x298] sm:$0xff] }
 0x6ee   :  { %2677 = vmatprep.subr.bf16.mxu1 %v4119_v44  ;;  %2720 = vmatprep.subr.bf16.mxu0 %v4121_v20  ;;  %v1900_v16 = vld [vmem:[#allocation10 + $0x2b8] sm:$0xff]  ;;  %v4150_v44 = vcombine.low %v1887_v22, %v1891_v23  ;;  %v4152_v20 = vcombine.low %v1888_v24, %v1892_v25  ;;  %v4183_v22 = vcombine.high %v1919_v17, %v1923_v18  ;;  %v1927_v24 = vld [vmem:[#allocation10 + $0x390] sm:$0xff] }
 0x6ef   :  { %v4161_v53 = vcombine.high %v1896_v11, %v1900_v16  ;;  %v1931_v25 = vld [vmem:[#allocation10 + $0x3b0] sm:$0xff] }
 0x6f1   :  { %2678 = vmatpush1.bf16.msra.mxu1 %v4118_v59  ;;  %2721 = vmatpush1.bf16.msra.mxu0 %v4120_v62  ;;  %v1904_v59 = vld [vmem:[#allocation10 + $0x2d8] sm:$0xff] }
 0x6f2   :  { %2679 = vmatprep.subr.bf16.mxu1 %v4127_v63  ;;  %2722 = vmatprep.subr.bf16.mxu0 %v4129_v0  ;;  %v1908_v62 = vld [vmem:[#allocation10 + $0x2f8] sm:$0xff]  ;;  %v4158_v63 = vcombine.low %v1895_v42, %v1899_v43  ;;  %v4160_v0 = vcombine.low %v1896_v11, %v1900_v16  ;;  %v4191_v42 = vcombine.high %v1927_v24, %v1931_v25  ;;  %v1935_v11 = vld [vmem:[#allocation10 + $0x3d0] sm:$0xff] }
 0x6f3   :  { %v4169_v3 = vcombine.high %v1904_v59, %v1908_v62  ;;  %v1939_v16 = vld [vmem:[#allocation10 + $0x3f0] sm:$0xff] }
 0x6f5   :  { %2680 = vmatpush1.bf16.msra.mxu1 %v4126_v8  ;;  %2723 = vmatpush1.bf16.msra.mxu0 %v4128_v9  ;;  %v1912_v8 = vld [vmem:[#allocation10 + $0x318] sm:$0xff] }
 0x6f6   :  { %2681 = vmatprep.subr.bf16.mxu1 %v4135_v10  ;;  %2724 = vmatprep.subr.bf16.mxu0 %v4137_v12  ;;  %v1916_v9 = vld [vmem:[#allocation10 + $0x338] sm:$0xff]  ;;  %v4166_v10 = vcombine.low %v1903_v54, %v1907_v34  ;;  %v4168_v12 = vcombine.low %v1904_v59, %v1908_v62  ;;  %v4199_v54 = vcombine.high %v1935_v11, %v1939_v16 }
 0x6f7   :  { %v4177_v14 = vcombine.high %v1912_v8, %v1916_v9  ;;  %v4198_v59 = vcombine.low %v1935_v11, %v1939_v16  ;;  %v4670_v11 = vld [vmem:[#allocation11 + $0xe0] ss:$8 sps:$4 sm:$0xff]   ;;  %v4675_v16 = vld [vmem:[#allocation11 + $0xf4] ss:$8 sps:$4 sm:$0xff]  }
 0x6f9   :  { %2682 = vmatpush1.bf16.msra.mxu1 %v4134_v6  ;;  %2725 = vmatpush1.bf16.msra.mxu0 %v4136_v7  ;;  %v1920_v6 = vld [vmem:[#allocation10 + $0x358] sm:$0xff] }
 0x6fa   :  { %2683 = vmatprep.subr.bf16.mxu1 %v4143_v19  ;;  %2726 = vmatprep.subr.bf16.mxu0 %v4145_v21  ;;  %v1924_v7 = vld [vmem:[#allocation10 + $0x378] sm:$0xff]  ;;  %v4174_v19 = vcombine.low %v1911_v4, %v1915_v5  ;;  %v4176_v21 = vcombine.low %v1912_v8, %v1916_v9  ;;  %v4636_v4 = vld [vmem:[#allocation11 + $0x24] ss:$8 sps:$4 sm:$0xff]   ;;  %v4634_v5 = vld [vmem:[#allocation11 + $0x20] ss:$8 sps:$4 sm:$0xff]  }
 0x6fb   :  { %v4185_v23 = vcombine.high %v1920_v6, %v1924_v7  ;;  %v4639_v8 = vld [vmem:[#allocation11 + $0x34] ss:$8 sps:$4 sm:$0xff]   ;;  %v4637_v9 = vld [vmem:[#allocation11 + $0x30] ss:$8 sps:$4 sm:$0xff]  }
 0x6fd   :  { %2684 = vmatpush1.bf16.msra.mxu1 %v4142_v26  ;;  %2727 = vmatpush1.bf16.msra.mxu0 %v4144_v27  ;;  %v1928_v26 = vld [vmem:[#allocation10 + $0x398] sm:$0xff] }
 0x6fe   :  { %2685 = vmatprep.subr.bf16.mxu1 %v4151_v33  ;;  %2728 = vmatprep.subr.bf16.mxu0 %v4153_v37  ;;  %v1932_v27 = vld [vmem:[#allocation10 + $0x3b8] sm:$0xff]  ;;  %v4182_v33 = vcombine.low %v1919_v17, %v1923_v18  ;;  %v4184_v37 = vcombine.low %v1920_v6, %v1924_v7  ;;  %v4646_v17 = vld [vmem:[#allocation11 + $0x60] ss:$8 sps:$4 sm:$0xff]   ;;  %v4654_v7 = vld [vmem:[#allocation11 + $0x84] ss:$8 sps:$4 sm:$0xff]  }
 0x6ff   :  { %v4193_v43 = vcombine.high %v1928_v26, %v1932_v27  ;;  %v4651_v18 = vld [vmem:[#allocation11 + $0x74] ss:$8 sps:$4 sm:$0xff]   ;;  %v4649_v6 = vld [vmem:[#allocation11 + $0x70] ss:$8 sps:$4 sm:$0xff]  }
 0x701   :  { %2686 = vmatpush1.bf16.msra.mxu1 %v4150_v44  ;;  %2729 = vmatpush1.bf16.msra.mxu0 %v4152_v20  ;;  %v1936_v44 = vld [vmem:[#allocation10 + $0x3d8] sm:$0xff] }
 0x702   :  { %2687 = vmatprep.subr.bf16.mxu1 %v4159_v52  ;;  %2730 = vmatprep.subr.bf16.mxu0 %v4161_v53  ;;  %v1940_v20 = vld [vmem:[#allocation10 + $0x3f8] sm:$0xff]  ;;  %v4190_v52 = vcombine.low %v1927_v24, %v1931_v25  ;;  %v4192_v53 = vcombine.low %v1928_v26, %v1932_v27  ;;  %v4658_v24 = vld [vmem:[#allocation11 + $0xa0] ss:$8 sps:$4 sm:$0xff]   ;;  %v4666_v27 = vld [vmem:[#allocation11 + $0xc4] ss:$8 sps:$4 sm:$0xff]  }
 0x703   :  { %v4201_v34 = vcombine.high %v1936_v44, %v1940_v20  ;;  %v4200_v62 = vcombine.low %v1936_v44, %v1940_v20  ;;  %v4663_v25 = vld [vmem:[#allocation11 + $0xb4] ss:$8 sps:$4 sm:$0xff]   ;;  %v4661_v26 = vld [vmem:[#allocation11 + $0xb0] ss:$8 sps:$4 sm:$0xff]   ;;  %v4678_v20 = vld [vmem:[#allocation11 + $0x104] ss:$8 sps:$4 sm:$0xff]  }
 0x704   :  { %v4673_v44 = vld [vmem:[#allocation11 + $0xf0] ss:$8 sps:$4 sm:$0xff]  }
 0x705   :  { %2688 = vmatpush1.bf16.msra.mxu1 %v4158_v63  ;;  %2731 = vmatpush1.bf16.msra.mxu0 %v4160_v0  ;;  %v4630_v63 = vld [vmem:[#allocation11 + $0x4] ss:$8 sps:$4 sm:$0xff]   ;;  %v4628_v0 = vld [vmem:[#allocation11] ss:$8 sps:$4 sm:$0xff]  }
 0x706   :  { %2689 = vmatprep.subr.bf16.mxu1 %v4167_v2  ;;  %2732 = vmatprep.subr.bf16.mxu0 %v4169_v3  ;;  %v4633_v2 = vld [vmem:[#allocation11 + $0x14] ss:$8 sps:$4 sm:$0xff]   ;;  %v4631_v3 = vld [vmem:[#allocation11 + $0x10] ss:$8 sps:$4 sm:$0xff]  }
 0x709   :  { %2690 = vmatpush1.bf16.msra.mxu1 %v4166_v10  ;;  %2733 = vmatpush1.bf16.msra.mxu0 %v4168_v12  ;;  %v4642_v10 = vld [vmem:[#allocation11 + $0x44] ss:$8 sps:$4 sm:$0xff]   ;;  %v4640_v12 = vld [vmem:[#allocation11 + $0x40] ss:$8 sps:$4 sm:$0xff]  }
 0x70a   :  { %2691 = vmatprep.subr.bf16.mxu1 %v4175_v13  ;;  %2734 = vmatprep.subr.bf16.mxu0 %v4177_v14  ;;  %v4645_v13 = vld [vmem:[#allocation11 + $0x54] ss:$8 sps:$4 sm:$0xff]   ;;  %v4643_v14 = vld [vmem:[#allocation11 + $0x50] ss:$8 sps:$4 sm:$0xff]  }
 0x70d   :  { %2692 = vmatpush1.bf16.msra.mxu1 %v4174_v19  ;;  %2735 = vmatpush1.bf16.msra.mxu0 %v4176_v21  ;;  %v4652_v19 = vld [vmem:[#allocation11 + $0x80] ss:$8 sps:$4 sm:$0xff]   ;;  %v4657_v21 = vld [vmem:[#allocation11 + $0x94] ss:$8 sps:$4 sm:$0xff]  }
 0x70e   :  { %2693 = vmatprep.subr.bf16.mxu1 %v4183_v22  ;;  %2736 = vmatprep.subr.bf16.mxu0 %v4185_v23  ;;  %v4655_v22 = vld [vmem:[#allocation11 + $0x90] ss:$8 sps:$4 sm:$0xff]   ;;  %v4660_v23 = vld [vmem:[#allocation11 + $0xa4] ss:$8 sps:$4 sm:$0xff]  }
 0x711   :  { %2694 = vmatpush1.bf16.msra.mxu1 %v4182_v33  ;;  %2737 = vmatpush1.bf16.msra.mxu0 %v4184_v37  ;;  %v4664_v33 = vld [vmem:[#allocation11 + $0xc0] ss:$8 sps:$4 sm:$0xff]   ;;  %v4669_v37 = vld [vmem:[#allocation11 + $0xd4] ss:$8 sps:$4 sm:$0xff]  }
 0x712   :  { %2695 = vmatprep.subr.bf16.mxu1 %v4191_v42  ;;  %2738 = vmatprep.subr.bf16.mxu0 %v4193_v43  ;;  %v4667_v42 = vld [vmem:[#allocation11 + $0xd0] ss:$8 sps:$4 sm:$0xff]   ;;  %v4672_v43 = vld [vmem:[#allocation11 + $0xe4] ss:$8 sps:$4 sm:$0xff]  }
 0x715   :  { %2696 = vmatpush1.bf16.msra.mxu1 %v4190_v52  ;;  %2739 = vmatpush1.bf16.msra.mxu0 %v4192_v53  ;;  %v5055_v52 = vmov 1966171168  }
 0x716   :  { %2697 = vmatprep.subr.bf16.mxu1 %v4199_v54  ;;  %2740 = vmatprep.subr.bf16.mxu0 %v4201_v34  ;;  %v2765_v53 = vunpack.c.l.s4 %v5055_v52  ;;  %v4687_v52 = vld [vmem:[#allocation11 + $0x134] ss:$8 sps:$4 sm:$0xff]  }
 0x718   :  { %v2766_v54 = vunpack.c.0.s8 %v2765_v53  ;;  %v4685_v53 = vld [vmem:[#allocation11 + $0x130] ss:$8 sps:$4 sm:$0xff]  }
 0x719   :  { %2698 = vmatpush1.bf16.msra.mxu1 %v4198_v59  ;;  %2741 = vmatpush1.bf16.msra.mxu0 %v4200_v62  ;;  %v5409_v59 = vld [vmem:[%s5590_s8] sm:$0xff] }
 0x71a   :  { %3664 = vmatprep.subr.bf16.mxu1 %v4630_v63  ;;  %v5404_v34 = vsub.s32 %v2766_v54, %v5237_v45  ;;  %v4690_v54 = vld [vmem:[#allocation11 + $0x144] ss:$8 sps:$4 sm:$0xff]  }
 0x71c   :  { %2700 = vmatmul.mubr.bf16.vlgmr.msra.gmra.mrb[20].mxu1 %v5397_v35  ;;  %2743 = vmatmul.mubr.bf16.vlgmr.msra.gmra.mrb[36].mxu0 %v5397_v35  ;;  %v4648_v35 = vld [vmem:[#allocation11 + $0x64] ss:$8 sps:$4 sm:$0xff]   ;;  %v2770_v62 = vrot.slane %v5409_v59, %v5404_v34 }
 0x71d   :  { %3665 = vmatpush1.bf16.msra.mxu1 %v4628_v0 }
 0x71e   :  { %3666 = vmatprep.subr.bf16.mxu1 %v4633_v2  ;;  %v2778_v63 = vcombine.high %v2770_v62, %v2770_v62 }
 0x720   :  { %v2800_v0 = vrot.slane %v2778_v63, %v5404_v34  ;;  %v4693_v63 = vld [vmem:[#allocation11 + $0x154] ss:$8 sps:$4 sm:$0xff]  }
 0x721   :  { %3667 = vmatpush1.bf16.msra.mxu1 %v4631_v3  ;;  %v5415_v3 = vrot.slane %v2770_v62, %v5404_v34  ;;  %v4688_v62 = vld [vmem:[#allocation11 + $0x140] ss:$8 sps:$4 sm:$0xff]  }
 0x722   :  { %3668 = vmatprep.subr.bf16.mxu1 %v4636_v4  ;;  %v2810_v2 = vcombine.high %v2800_v0, %v2800_v0  ;;  %v2820_v45 = vpack.i.b16 %v2800_v0, %v2800_v0  ;;  %v4691_v0 = vld [vmem:[#allocation11 + $0x150] ss:$8 sps:$4 sm:$0xff]  }
 0x723   :  { %v2813_v4 = vpack.i.b16 %v5415_v3, %v5415_v3 }
 0x725   :  { %3669 = vmatpush1.bf16.msra.mxu1 %v4634_v5  ;;  %v2834_v5 = vpack.i.b16 %v2810_v2, %v2810_v2  ;;  %v4696_v2 = vld [vmem:[#allocation11 + $0x164] ss:$8 sps:$4 sm:$0xff]  }
 0x726   :  { %3670 = vmatprep.subr.bf16.mxu1 %v4639_v8 }
 0x729   :  { %3671 = vmatpush1.bf16.msra.mxu1 %v4637_v9 }
 0x72a   :  { %3672 = vmatprep.subr.bf16.mxu1 %v4642_v10 }
 0x72d   :  { %3673 = vmatpush1.bf16.msra.mxu1 %v4640_v12 }
 0x72e   :  { %3674 = vmatprep.subr.bf16.mxu1 %v4645_v13  ;;  %v2818_v13 = vrot.slane %v2813_v4, %v5245_v49  ;;  %v4694_v4 = vld [vmem:[#allocation11 + $0x160] ss:$8 sps:$4 sm:$0xff]  }
 0x731   :  { %3675 = vmatpush1.bf16.msra.mxu1 %v4643_v14 }
 0x732   :  { %3676 = vmatprep.subr.bf16.mxu1 %v4648_v35 }
 0x735   :  { %3677 = vmatpush1.bf16.msra.mxu1 %v4646_v17  ;;  %v2825_v17 = vrot.slane %v2820_v45, %v5245_v49  ;;  %v4699_v45 = vld [vmem:[#allocation11 + $0x174] ss:$8 sps:$4 sm:$0xff]  }
 0x736   :  { %3678 = vmatprep.subr.bf16.mxu1 %v4651_v18  ;;  %v2839_v18 = vrot.slane %v2834_v5, %v5245_v49  ;;  %v4697_v5 = vld [vmem:[#allocation11 + $0x170] ss:$8 sps:$4 sm:$0xff]  }
 0x739   :  { %3679 = vmatpush1.bf16.msra.mxu1 %v4649_v6 }
 0x73a   :  { %3680 = vmatprep.subr.bf16.mxu1 %v4654_v7 }
 0x73d   :  { %3681 = vmatpush1.bf16.msra.mxu1 %v4652_v19 }
 0x73e   :  { %3682 = vmatprep.subr.bf16.mxu1 %v4657_v21 }
 0x741   :  { %3683 = vmatpush1.bf16.msra.mxu1 %v4655_v22 }
 0x742   :  { %3684 = vmatprep.subr.bf16.mxu1 %v4660_v23 }
 0x745   :  { %3685 = vmatpush1.bf16.msra.mxu1 %v4658_v24 }
 0x746   :  { %3686 = vmatprep.subr.bf16.mxu1 %v4663_v25 }
 0x749   :  { %3687 = vmatpush1.bf16.msra.mxu1 %v4661_v26 }
 0x74a   :  { %3688 = vmatprep.subr.bf16.mxu1 %v4666_v27  ;;  %v5056_v27 = vmov 0  }
 0x74d   :  { %3689 = vmatpush1.bf16.msra.mxu1 %v4664_v33 }
 0x74e   :  { %3690 = vmatprep.subr.bf16.mxu1 %v4669_v37  ;;  %v4676_v37 = vld [vmem:[#allocation11 + $0x100] ss:$8 sps:$4 sm:$0xff]  }
 0x751   :  { %3691 = vmatpush1.bf16.msra.mxu1 %v4667_v42 }
 0x752   :  { %3692 = vmatprep.subr.bf16.mxu1 %v4672_v43  ;;  %v4681_v43 = vld [vmem:[#allocation11 + $0x114] ss:$8 sps:$4 sm:$0xff]  }
 0x755   :  { %3693 = vmatpush1.bf16.msra.mxu1 %v4670_v11 }
 0x756   :  { %3694 = vmatprep.subr.bf16.mxu1 %v4675_v16  ;;  %v4679_v16 = vld [vmem:[#allocation11 + $0x110] ss:$8 sps:$4 sm:$0xff]  }
 0x759   :  { %3695 = vmatpush1.bf16.msra.mxu1 %v4673_v44  ;;  %v4684_v44 = vld [vmem:[#allocation11 + $0x124] ss:$8 sps:$4 sm:$0xff]  }
 0x75a   :  { %3707 = vmatprep.subr.bf16.mxu1 %v4678_v20  ;;  %v4682_v20 = vld [vmem:[#allocation11 + $0x120] ss:$8 sps:$4 sm:$0xff]  }
 0x7af   :  { %v2615_v8 = vpop.f32.mrb[16].mxu1  ;;  %v5419_v9 = vpop.f32.mrb[32].mxu0 }
 0x7b0   :  { %v2617_v10 = vpop.f32.mrb[17].mxu1  ;;  %v2660_v12 = vpop.f32.mrb[33].mxu0 }
 0x7b1   :  { %v2619_v14 = vpop.f32.mrb[18].mxu1  ;;  %v5422_v35 = vpop.f32.mrb[34].mxu0 }
 0x7b2   :  { %v2753_v6 = vpack.c.bf16 %v2619_v14, %v2615_v8  ;;  %v2755_v7 = vpack.c.bf16 %v5422_v35, %v5419_v9  ;;  %v2621_v19 = vpop.f32.mrb[19].mxu1  ;;  %v2664_v21 = vpop.f32.mrb[35].mxu0  ;;  %v4702_v8 = vld [vmem:[#allocation11 + $0x184] ss:$8 sps:$4 sm:$0xff]   ;;  %v4703_v14 = vld [vmem:[#allocation11 + $0x190] ss:$8 sps:$4 sm:$0xff]  }
 0x7b3   :  { %v2754_v22 = vpack.c.bf16 %v2621_v19, %v2617_v10  ;;  %v2756_v23 = vpack.c.bf16 %v2664_v21, %v2660_v12  ;;  %v4700_v10 = vld [vmem:[#allocation11 + $0x180] ss:$8 sps:$4 sm:$0xff]   ;;  %v4705_v12 = vld [vmem:[#allocation11 + $0x194] ss:$8 sps:$4 sm:$0xff]   ;;  %v4728_v9 = vld [vmem:[#allocation11 + $0x210] ss:$8 sps:$4 sm:$0xff]  }
 0x7b4   :  { %v2868_v24 = vadd.bf16 %v2818_v13, %v2753_v6  ;;  %v2763_v13 = vcombine.high %v5409_v59, %v5409_v59  ;;  %v4706_v6 = vld [vmem:[#allocation11 + $0x1a0] ss:$8 sps:$4 sm:$0xff]   ;;  %v4711_v19 = vld [vmem:[#allocation11 + $0x1b4] ss:$8 sps:$4 sm:$0xff]   ;;  %v4733_v35 = vld [vmem:[#allocation11 + $0x224] ss:$8 sps:$4 sm:$0xff]  }
 0x7b5   :  { %v2869_v25 = vadd.bf16 %v2825_v17, %v2754_v22  ;;  %v2871_v26 = vadd.bf16 %v2839_v18, %v2756_v23  ;;  %v4708_v17 = vld [vmem:[#allocation11 + $0x1a4] ss:$8 sps:$4 sm:$0xff]   ;;  %v4709_v22 = vld [vmem:[#allocation11 + $0x1b0] ss:$8 sps:$4 sm:$0xff]   ;;  %v4712_v59 = vld [vmem:[#allocation11 + $0x1c0] ss:$8 sps:$4 sm:$0xff]  }
 0x7b6   :  { %v2876_v42 = vmax.bf16 %v5056_v27, %v2868_v24  ;;  %v2777_v18 = vrot.slane %v2763_v13, %v5404_v34  ;;  %v4714_v23 = vld [vmem:[#allocation11 + $0x1c4] ss:$8 sps:$4 sm:$0xff]  }
 0x7b7   :  { %v2877_v33 = vmax.bf16 %v5056_v27, %v2869_v25  ;;  %v2879_v11 = vmax.bf16 %v5056_v27, %v2871_v26  ;;  %v2808_v26 = vcombine.high %v5415_v3, %v5415_v3 }
 0x7b8   :  { %v2779_v21 = vcombine.high %v2777_v18, %v2777_v18  ;;  %v2793_v24 = vrot.slane %v2777_v18, %v5404_v34 }
 0x7b9   :  { %3696 = vmatprep.mubr.bf16.mxu1 %v2877_v33  ;;  %v4717_v33 = vld [vmem:[#allocation11 + $0x1d4] ss:$8 sps:$4 sm:$0xff]  }
 0x7ba   :  { %3697 = vmatmul.mubr.bf16.vlgmr.msra.gmra.mrb[24].mxu1 %v2876_v42  ;;  %v2807_v25 = vrot.slane %v2779_v21, %v5404_v34  ;;  %v4722_v21 = vld [vmem:[#allocation11 + $0x1f0] ss:$8 sps:$4 sm:$0xff]  }
 0x7bb   :  { %3708 = vmatpush1.bf16.msra.mxu1 %v4676_v37  ;;  %3739 = vmatprep.mubr.bf16.mxu1 %v2879_v11  ;;  %v2809_v37 = vcombine.high %v2793_v24, %v2793_v24  ;;  %v2827_v11 = vpack.i.b16 %v2808_v26, %v2808_v26 }
 0x7bc   :  { %3709 = vmatprep.subr.bf16.mxu1 %v4681_v43  ;;  %v2811_v42 = vcombine.high %v2807_v25, %v2807_v25  ;;  %v4715_v43 = vld [vmem:[#allocation11 + $0x1d0] ss:$8 sps:$4 sm:$0xff]  }
 0x7bf   :  { %3710 = vmatpush1.bf16.msra.mxu1 %v4679_v16  ;;  %v2841_v16 = vpack.i.b16 %v2793_v24, %v2793_v24 }
 0x7c0   :  { %3711 = vmatprep.subr.bf16.mxu1 %v4684_v44  ;;  %v2855_v44 = vpack.i.b16 %v2809_v37, %v2809_v37 }
 0x7c3   :  { %3712 = vmatpush1.bf16.msra.mxu1 %v4682_v20  ;;  %v4721_v20 = vld [vmem:[#allocation11 + $0x1e4] ss:$8 sps:$4 sm:$0xff]  }
 0x7c4   :  { %3713 = vmatprep.subr.bf16.mxu1 %v4687_v52  ;;  %v2848_v52 = vpack.i.b16 %v2807_v25, %v2807_v25  ;;  %v4727_v25 = vld [vmem:[#allocation11 + $0x204] ss:$8 sps:$4 sm:$0xff]  }
 0x7c7   :  { %3714 = vmatpush1.bf16.msra.mxu1 %v4685_v53  ;;  %v2862_v53 = vpack.i.b16 %v2811_v42, %v2811_v42  ;;  %v4730_v42 = vld [vmem:[#allocation11 + $0x214] ss:$8 sps:$4 sm:$0xff]  }
 0x7c8   :  { %3715 = vmatprep.subr.bf16.mxu1 %v4690_v54 }
 0x7cb   :  { %3716 = vmatpush1.bf16.msra.mxu1 %v4688_v62  ;;  %v4719_v62 = vld [vmem:[#allocation11 + $0x1e0] ss:$8 sps:$4 sm:$0xff]  }
 0x7cc   :  { %3717 = vmatprep.subr.bf16.mxu1 %v4693_v63  ;;  %v2832_v63 = vrot.slane %v2827_v11, %v5245_v49  ;;  %v4736_v11 = vld [vmem:[#allocation11 + $0x234] ss:$8 sps:$4 sm:$0xff]  }
 0x7cf   :  { %3718 = vmatpush1.bf16.msra.mxu1 %v4691_v0 }
 0x7d0   :  { %3719 = vmatprep.subr.bf16.mxu1 %v4696_v2  ;;  %v2846_v2 = vrot.slane %v2841_v16, %v5245_v49  ;;  %v4734_v16 = vld [vmem:[#allocation11 + $0x230] ss:$8 sps:$4 sm:$0xff]  }
 0x7d3   :  { %3720 = vmatpush1.bf16.msra.mxu1 %v4694_v4  ;;  %v2860_v4 = vrot.slane %v2855_v44, %v5245_v49  ;;  %v4739_v44 = vld [vmem:[#allocation11 + $0x244] ss:$8 sps:$4 sm:$0xff]  }
 0x7d4   :  { %3721 = vmatprep.subr.bf16.mxu1 %v4699_v45  ;;  %v4724_v45 = vld [vmem:[#allocation11 + $0x1f4] ss:$8 sps:$4 sm:$0xff]  }
 0x7d7   :  { %3722 = vmatpush1.bf16.msra.mxu1 %v4697_v5 }
 0x7d8   :  { %3723 = vmatprep.subr.bf16.mxu1 %v4702_v8 }
 0x7db   :  { %3724 = vmatpush1.bf16.msra.mxu1 %v4700_v10  ;;  %v2853_v10 = vrot.slane %v2848_v52, %v5245_v49  ;;  %v4742_v52 = vld [vmem:[#allocation11 + $0x254] ss:$8 sps:$4 sm:$0xff]  }
 0x7dc   :  { %3725 = vmatprep.subr.bf16.mxu1 %v4705_v12  ;;  %v2867_v12 = vrot.slane %v2862_v53, %v5245_v49  ;;  %v4740_v53 = vld [vmem:[#allocation11 + $0x250] ss:$8 sps:$4 sm:$0xff]  }
 0x7df   :  { %3726 = vmatpush1.bf16.msra.mxu1 %v4703_v14 }
 0x7e0   :  { %3727 = vmatprep.subr.bf16.mxu1 %v4708_v17 }
 0x7e3   :  { %3728 = vmatpush1.bf16.msra.mxu1 %v4706_v6 }
 0x7e4   :  { %3729 = vmatprep.subr.bf16.mxu1 %v4711_v19 }
 0x7e7   :  { %3730 = vmatpush1.bf16.msra.mxu1 %v4709_v22  ;;  %v2870_v22 = vadd.bf16 %v2832_v63, %v2755_v7  ;;  %v4731_v7 = vld [vmem:[#allocation11 + $0x220] ss:$8 sps:$4 sm:$0xff]   ;;  %v4746_v63 = vld [vmem:[#allocation11 + $0x270] ss:$8 sps:$4 sm:$0xff]  }
 0x7e8   :  { %3731 = vmatprep.subr.bf16.mxu1 %v4714_v23 }
 0x7e9   :  { %v2878_v37 = vmax.bf16 %v5056_v27, %v2870_v22  ;;  %v4775_v22 = vld [vmem:[#allocation11 + $0x304] ss:$8 sps:$4 sm:$0xff]  }
 0x7eb   :  { %3732 = vmatpush1.bf16.msra.mxu1 %v4712_v59 }
 0x7ec   :  { %3733 = vmatprep.subr.bf16.mxu1 %v4717_v33  ;;  %v4725_v33 = vld [vmem:[#allocation11 + $0x200] ss:$8 sps:$4 sm:$0xff]  }
 0x7ef   :  { %v2701_v54 = vpop.f32.mrb[20].mxu1  ;;  %v2744_v34 = vpop.f32.mrb[36].mxu0  ;;  %3734 = vmatpush1.bf16.msra.mxu1 %v4715_v43 }
 0x7f0   :  { %v2703_v3 = vpop.f32.mrb[21].mxu1  ;;  %v2746_v0 = vpop.f32.mrb[37].mxu0  ;;  %3735 = vmatprep.subr.bf16.mxu1 %v4721_v20  ;;  %v4737_v20 = vld [vmem:[#allocation11 + $0x240] ss:$8 sps:$4 sm:$0xff]  }
 0x7f1   :  { %v2705_v5 = vpop.f32.mrb[22].mxu1  ;;  %v2748_v8 = vpop.f32.mrb[38].mxu0 }
 0x7f2   :  { %v2757_v13 = vpack.c.bf16 %v2705_v5, %v2701_v54  ;;  %v2759_v14 = vpack.c.bf16 %v2748_v8, %v2744_v34  ;;  %v2707_v17 = vpop.f32.mrb[23].mxu1  ;;  %v2750_v18 = vpop.f32.mrb[39].mxu0  ;;  %v4745_v54 = vld [vmem:[#allocation11 + $0x264] ss:$8 sps:$4 sm:$0xff]   ;;  %v4743_v34 = vld [vmem:[#allocation11 + $0x260] ss:$8 sps:$4 sm:$0xff]  }
 0x7f3   :  { %v2758_v6 = vpack.c.bf16 %v2707_v17, %v2703_v3  ;;  %v2760_v19 = vpack.c.bf16 %v2750_v18, %v2746_v0  ;;  %3736 = vmatpush1.bf16.msra.mxu1 %v4719_v62  ;;  %v4748_v62 = vld [vmem:[#allocation11 + $0x274] ss:$8 sps:$4 sm:$0xff]   ;;  %v4751_v3 = vld [vmem:[#allocation11 + $0x284] ss:$8 sps:$4 sm:$0xff]   ;;  %v4749_v0 = vld [vmem:[#allocation11 + $0x280] ss:$8 sps:$4 sm:$0xff]  }
 0x7f4   :  { %v5446_v23 = vadd.bf16 %v2846_v2, %v2757_v13  ;;  %v5448_v24 = vadd.bf16 %v2860_v4, %v2759_v14  ;;  %3737 = vmatprep.subr.bf16.mxu1 %v4724_v45  ;;  %v4754_v2 = vld [vmem:[#allocation11 + $0x294] ss:$8 sps:$4 sm:$0xff]   ;;  %v4752_v4 = vld [vmem:[#allocation11 + $0x290] ss:$8 sps:$4 sm:$0xff]   ;;  %v4757_v45 = vld [vmem:[#allocation11 + $0x2a4] ss:$8 sps:$4 sm:$0xff]  }
 0x7f5   :  { %v2873_v59 = vadd.bf16 %v2853_v10, %v2758_v6  ;;  %v5450_v26 = vadd.bf16 %v2867_v12, %v2760_v19  ;;  %v4755_v5 = vld [vmem:[#allocation11 + $0x2a0] ss:$8 sps:$4 sm:$0xff]   ;;  %v4760_v8 = vld [vmem:[#allocation11 + $0x2b4] ss:$8 sps:$4 sm:$0xff]   ;;  %v4758_v10 = vld [vmem:[#allocation11 + $0x2b0] ss:$8 sps:$4 sm:$0xff]  }
 0x7f6   :  { %v4763_v12 = vld [vmem:[#allocation11 + $0x2c4] ss:$8 sps:$4 sm:$0xff]   ;;  %v4761_v13 = vld [vmem:[#allocation11 + $0x2c0] ss:$8 sps:$4 sm:$0xff]   ;;  %v4766_v14 = vld [vmem:[#allocation11 + $0x2d4] ss:$8 sps:$4 sm:$0xff]  }
 0x7f7   :  { %3738 = vmatpush1.bf16.msra.mxu1 %v4722_v21  ;;  %v2881_v43 = vmax.bf16 %v5056_v27, %v2873_v59  ;;  %v4764_v17 = vld [vmem:[#allocation11 + $0x2d0] ss:$8 sps:$4 sm:$0xff]   ;;  %v4769_v18 = vld [vmem:[#allocation11 + $0x2e4] ss:$8 sps:$4 sm:$0xff]   ;;  %v4767_v6 = vld [vmem:[#allocation11 + $0x2e0] ss:$8 sps:$4 sm:$0xff]   ;;  %v2880_v59 = vmax.bf16 %v5056_v27, %v5446_v23 }
 0x7f8   :  { %3750 = vmatprep.subr.bf16.mxu1 %v4727_v25  ;;  %v4772_v19 = vld [vmem:[#allocation11 + $0x2f4] ss:$8 sps:$4 sm:$0xff]   ;;  %v4770_v21 = vld [vmem:[#allocation11 + $0x2f0] ss:$8 sps:$4 sm:$0xff]   ;;  %v4773_v25 = vld [vmem:[#allocation11 + $0x300] ss:$8 sps:$4 sm:$0xff]  }
 0x7f9   :  { %v4785_v23 = vld [vmem:[#allocation11 + $0x340] ss:$8 sps:$4 sm:$0xff]  }
 0x7fa   :  { %3740 = vmatmul.mubr.bf16.vlgmr.msra.gmra.mrb[24].mxu1 %v2878_v37  ;;  %v2883_v37 = vmax.bf16 %v5056_v27, %v5450_v26  ;;  %v4788_v26 = vld [vmem:[#allocation11 + $0x350] ss:$8 sps:$4 sm:$0xff]  }
 0x7fb   :  { %3751 = vmatpush1.bf16.msra.mxu1 %v4725_v33  ;;  %3782 = vmatprep.mubr.bf16.mxu1 %v2881_v43  ;;  %v4778_v33 = vld [vmem:[#allocation11 + $0x314] ss:$8 sps:$4 sm:$0xff]   ;;  %v4781_v43 = vld [vmem:[#allocation11 + $0x324] ss:$8 sps:$4 sm:$0xff]  }
 0x7fc   :  { %3752 = vmatprep.subr.bf16.mxu1 %v4730_v42  ;;  %v4776_v42 = vld [vmem:[#allocation11 + $0x310] ss:$8 sps:$4 sm:$0xff]  }
 0x7ff   :  { %3753 = vmatpush1.bf16.msra.mxu1 %v4728_v9  ;;  %v4779_v9 = vld [vmem:[#allocation11 + $0x320] ss:$8 sps:$4 sm:$0xff]  }
 0x800   :  { %3754 = vmatprep.subr.bf16.mxu1 %v4733_v35  ;;  %v4784_v35 = vld [vmem:[#allocation11 + $0x334] ss:$8 sps:$4 sm:$0xff]  }
 0x803   :  { %3755 = vmatpush1.bf16.msra.mxu1 %v4731_v7  ;;  %v4782_v7 = vld [vmem:[#allocation11 + $0x330] ss:$8 sps:$4 sm:$0xff]  }
 0x804   :  { %3756 = vmatprep.subr.bf16.mxu1 %v4736_v11  ;;  %v4787_v11 = vld [vmem:[#allocation11 + $0x344] ss:$8 sps:$4 sm:$0xff]  }
 0x807   :  { %3757 = vmatpush1.bf16.msra.mxu1 %v4734_v16  ;;  %v4790_v16 = vld [vmem:[#allocation11 + $0x354] ss:$8 sps:$4 sm:$0xff]  }
 0x808   :  { %3758 = vmatprep.subr.bf16.mxu1 %v4739_v44  ;;  %v4793_v44 = vld [vmem:[#allocation11 + $0x364] ss:$8 sps:$4 sm:$0xff]  }
 0x80b   :  { %3759 = vmatpush1.bf16.msra.mxu1 %v4737_v20  ;;  %v4791_v20 = vld [vmem:[#allocation11 + $0x360] ss:$8 sps:$4 sm:$0xff]  }
 0x80c   :  { %3760 = vmatprep.subr.bf16.mxu1 %v4742_v52  ;;  %v4796_v52 = vld [vmem:[#allocation11 + $0x374] ss:$8 sps:$4 sm:$0xff]  }
 0x80f   :  { %3761 = vmatpush1.bf16.msra.mxu1 %v4740_v53  ;;  %v4794_v53 = vld [vmem:[#allocation11 + $0x370] ss:$8 sps:$4 sm:$0xff]  }
 0x810   :  { %3762 = vmatprep.subr.bf16.mxu1 %v4745_v54  ;;  %v4799_v54 = vld [vmem:[#allocation11 + $0x384] ss:$8 sps:$4 sm:$0xff]  }
 0x813   :  { %3763 = vmatpush1.bf16.msra.mxu1 %v4743_v34  ;;  %v4797_v34 = vld [vmem:[#allocation11 + $0x380] ss:$8 sps:$4 sm:$0xff]  }
 0x814   :  { %3764 = vmatprep.subr.bf16.mxu1 %v4748_v62  ;;  %v4802_v62 = vld [vmem:[#allocation11 + $0x394] ss:$8 sps:$4 sm:$0xff]  }
 0x817   :  { %3765 = vmatpush1.bf16.msra.mxu1 %v4746_v63  ;;  %v4800_v63 = vld [vmem:[#allocation11 + $0x390] ss:$8 sps:$4 sm:$0xff]  }
 0x818   :  { %3766 = vmatprep.subr.bf16.mxu1 %v4751_v3  ;;  %v4805_v3 = vld [vmem:[#allocation11 + $0x3a4] ss:$8 sps:$4 sm:$0xff]  }
 0x81b   :  { %3767 = vmatpush1.bf16.msra.mxu1 %v4749_v0  ;;  %v4803_v0 = vld [vmem:[#allocation11 + $0x3a0] ss:$8 sps:$4 sm:$0xff]  }
 0x81c   :  { %3768 = vmatprep.subr.bf16.mxu1 %v4754_v2  ;;  %v4808_v2 = vld [vmem:[#allocation11 + $0x3b4] ss:$8 sps:$4 sm:$0xff]  }
 0x81f   :  { %3769 = vmatpush1.bf16.msra.mxu1 %v4752_v4  ;;  %v4806_v4 = vld [vmem:[#allocation11 + $0x3b0] ss:$8 sps:$4 sm:$0xff]  }
 0x820   :  { %3770 = vmatprep.subr.bf16.mxu1 %v4757_v45  ;;  %v4811_v45 = vld [vmem:[#allocation11 + $0x3c4] ss:$8 sps:$4 sm:$0xff]  }
 0x823   :  { %3771 = vmatpush1.bf16.msra.mxu1 %v4755_v5  ;;  %v4809_v5 = vld [vmem:[#allocation11 + $0x3c0] ss:$8 sps:$4 sm:$0xff]  }
 0x824   :  { %3772 = vmatprep.subr.bf16.mxu1 %v4760_v8  ;;  %v4814_v8 = vld [vmem:[#allocation11 + $0x3d4] ss:$8 sps:$4 sm:$0xff]  }
 0x827   :  { %3773 = vmatpush1.bf16.msra.mxu1 %v4758_v10  ;;  %v4812_v10 = vld [vmem:[#allocation11 + $0x3d0] ss:$8 sps:$4 sm:$0xff]  }
 0x828   :  { %3774 = vmatprep.subr.bf16.mxu1 %v4763_v12  ;;  %v4817_v12 = vld [vmem:[#allocation11 + $0x3e4] ss:$8 sps:$4 sm:$0xff]  }
 0x82b   :  { %3775 = vmatpush1.bf16.msra.mxu1 %v4761_v13  ;;  %v4815_v13 = vld [vmem:[#allocation11 + $0x3e0] ss:$8 sps:$4 sm:$0xff]  }
 0x82c   :  { %3776 = vmatprep.subr.bf16.mxu1 %v4766_v14  ;;  %v4820_v14 = vld [vmem:[#allocation11 + $0x3f4] ss:$8 sps:$4 sm:$0xff]  }
 0x82f   :  { %3777 = vmatpush1.bf16.msra.mxu1 %v4764_v17  ;;  %v4818_v17 = vld [vmem:[#allocation11 + $0x3f0] ss:$8 sps:$4 sm:$0xff]  }
 0x830   :  { %3778 = vmatprep.subr.bf16.mxu1 %v4769_v18  ;;  %v2882_v18 = vmax.bf16 %v5056_v27, %v5448_v24 }
 0x833   :  { %3779 = vmatpush1.bf16.msra.mxu1 %v4767_v6  ;;  %v3012_v6 = vld [vmem:[%s5592_s10] sm:$0x3]  ;;  %s5057_s10 = smov 40  }
 0x834   :  { %3780 = vmatprep.subr.bf16.mxu1 %v4772_v19  ;;  %v3017_v19 = vrot.slane %v3012_v6, %v5245_v49 }
 0x837   :  { %3781 = vmatpush1.bf16.msra.mxu1 %v4770_v21  ;;  %v3021_v21 = vrot.slane %v3012_v6, %v5248_v51 }
 0x838   :  { %3793 = vmatprep.subr.bf16.mxu1 %v4775_v22 }
 0x83a   :  { %3783 = vmatmul.mubr.bf16.vlgmr.msra.gmra.mrb[24].mxu1 %v2880_v59 }
 0x83b   :  { %3794 = vmatpush1.bf16.msra.mxu1 %v4773_v25  ;;  %3825 = vmatprep.mubr.bf16.mxu1 %v2883_v37 }
 0x83c   :  { %3795 = vmatprep.subr.bf16.mxu1 %v4778_v33 }
 0x83f   :  { %3796 = vmatpush1.bf16.msra.mxu1 %v4776_v42 }
 0x840   :  { %3797 = vmatprep.subr.bf16.mxu1 %v4781_v43 }
 0x843   :  { %3798 = vmatpush1.bf16.msra.mxu1 %v4779_v9 }
 0x844   :  { %3799 = vmatprep.subr.bf16.mxu1 %v4784_v35 }
 0x847   :  { %3800 = vmatpush1.bf16.msra.mxu1 %v4782_v7 }
 0x848   :  { %3801 = vmatprep.subr.bf16.mxu1 %v4787_v11 }
 0x84b   :  { %3802 = vmatpush1.bf16.msra.mxu1 %v4785_v23 }
 0x84c   :  { %3803 = vmatprep.subr.bf16.mxu1 %v4790_v16  ;;  %v1329_v16 = vrot.slane %v1321_v40, %v5330_v61 }
 0x84f   :  { %3804 = vmatpush1.bf16.msra.mxu1 %v4788_v26 }
 0x850   :  { %3805 = vmatprep.subr.bf16.mxu1 %v4793_v44 }
 0x853   :  { %3806 = vmatpush1.bf16.msra.mxu1 %v4791_v20 }
 0x854   :  { %3807 = vmatprep.subr.bf16.mxu1 %v4796_v52 }
 0x857   :  { %3808 = vmatpush1.bf16.msra.mxu1 %v4794_v53 }
 0x858   :  { %3809 = vmatprep.subr.bf16.mxu1 %v4799_v54 }
 0x85b   :  { %3810 = vmatpush1.bf16.msra.mxu1 %v4797_v34 }
 0x85c   :  { %3811 = vmatprep.subr.bf16.mxu1 %v4802_v62 }
 0x85f   :  { %3812 = vmatpush1.bf16.msra.mxu1 %v4800_v63 }
 0x860   :  { %3813 = vmatprep.subr.bf16.mxu1 %v4805_v3 }
 0x863   :  { %3814 = vmatpush1.bf16.msra.mxu1 %v4803_v0 }
 0x864   :  { %3815 = vmatprep.subr.bf16.mxu1 %v4808_v2 }
 0x867   :  { %3816 = vmatpush1.bf16.msra.mxu1 %v4806_v4 }
 0x868   :  { %3817 = vmatprep.subr.bf16.mxu1 %v4811_v45 }
 0x86b   :  { %3818 = vmatpush1.bf16.msra.mxu1 %v4809_v5 }
 0x86c   :  { %3819 = vmatprep.subr.bf16.mxu1 %v4814_v8 }
 0x86f   :  { %3820 = vmatpush1.bf16.msra.mxu1 %v4812_v10 }
 0x870   :  { %3821 = vmatprep.subr.bf16.mxu1 %v4817_v12 }
 0x873   :  { %3822 = vmatpush1.bf16.msra.mxu1 %v4815_v13  ;;  %v1046_v13 = vcombine.high %v5335_v1, %v5051_v38 }
 0x874   :  { %3823 = vmatprep.subr.bf16.mxu1 %v4820_v14 }
 0x877   :  { %3824 = vmatpush1.bf16.msra.mxu1 %v4818_v17 }
 0x87a   :  { %3826 = vmatmul.mubr.bf16.vlgmr.msra.gmra.mrb[24].mxu1 %v2882_v18 }
 0x94d   :  { %v3827_v22 = vpop.f32.mrb[24].mxu1 }
 0x94e   :  { %v4394_v25 = vadd.f32 %v3827_v22, %v3017_v19  ;;  %v3829_v59 = vpop.f32.mrb[25].mxu1 }
 0x94f   :  { %v4395_v33 = vadd.f32 %v3829_v59, %v3021_v21  ;;  %v3831_v37 = vpop.f32.mrb[26].mxu1 }
 0x950   :  { %v3836_v42 = vadd.f32 %v4394_v25, %v5389_v30  ;;  %v4396_v43 = vadd.f32 %v3831_v37, %v3017_v19  ;;  %v3833_v9 = vpop.f32.mrb[27].mxu1  ;;  %v1336_v30 = vrot.slane %v1322_v28, %v5330_v61  ;;  %v1019_v28 = vrot.slane %v1011_v55, %v5330_v61 }
 0x951   :  { %v3837_v27 = vadd.f32 %v4395_v33, %v5385_v15  ;;  %v4397_v24 = vadd.f32 %v3833_v9, %v3021_v21  ;;  %v1353_v15 = vcombine.high %v1329_v16, %v5051_v38 }
 0x952   :  { %v3838_v35 = vadd.f32 %v4396_v43, %v5391_v32  ;;  %v1354_v32 = vcombine.high %v1336_v30, %v5051_v38  ;;  %v1043_v36 = vcombine.high %v1019_v28, %v5051_v38 }
 0x953   :  { %v3839_v7 = vadd.f32 %v4397_v24, %v5387_v39  ;;  %v3842_v11 = vadd.f32 %v3837_v27, %v3836_v42  ;;  %v1345_v39 = vrot.slane %v1337_v46, %v5330_v61  ;;  %v1035_v46 = vrot.slane %v1027_v60, %v5330_v61 }
 0x955   :  { %3843 = vadd.xlane.f32.xlu0 %v3842_v11  ;;  %v3845_v23 = vadd.f32 %v3839_v7, %v3838_v35  ;;  %v1355_v40 = vcombine.high %v1345_v39, %v5051_v38  ;;  %v1045_v55 = vcombine.high %v1035_v46, %v5051_v38 }
 0x957   :  { %3846 = vadd.xlane.f32.xlu1 %v3845_v23 }
 0x968   :  { %1362 = vrot.lane.b32.xlu1 %v1336_v30, %s5043_s28 }
 0x96b   :  { %1358 = vrot.lane.b32.xlu0 %v1353_v15, %s5046_s15 }
 0x96c   :  { %1366 = vrot.lane.b32.xlu1 %v1354_v32, %s5039_s24 }
 0x96f   :  { %1374 = vrot.lane.b32.xlu0 %v1355_v40, %s5057_s10 }
 0x970   :  { %1370 = vrot.lane.b32.xlu1 %v1345_v39, %s5049_s1  ;;  %v3840_v39 = vld [vmem:[%s5593_s11] sm:$0x3] }
 0x973   :  { %1382 = vrot.lane.b32.xlu0 %v1356_v31, %s5058_s20 }
 0x974   :  { %1378 = vrot.lane.b32.xlu1 %v1352_v29, %s5059_s22 }
 0x977   :  { %1048 = vrot.lane.b32.xlu0 %v1043_v36, %s5046_s15  ;;  %s5061_s15 = smov [#allocation14]  }
 0x978   :  { %1052 = vrot.lane.b32.xlu1 %v1026_v41, %s5043_s28 }
 0x97b   :  { %1060 = vrot.lane.b32.xlu0 %v1035_v46, %s5049_s1  ;;  %s3926_s1 = sshll.u32 %s5061_s15, 4  ;;  %s3927_s1 = int_to_ptr.vmem [resolvable:$true] %s3926_s1 }
 0x97c   :  { %1056 = vrot.lane.b32.xlu1 %v1044_v47, %s5039_s24  ;;  %s5060_s24 = smov 64   ;;  %s4981_s25 = scalar_lea.vmem %s3927_s1, 32 }
 0x97d   :  { %p4982_p6 = scmp.ne.s32.totalorder %s3927_s1, %s4981_s25  ;;  %p4986_p7 = scmp.lt.s32.totalorder %s3927_s1, %s3927_s1 }
 0x97e   :  { %p4987_p8 = scmp.lt.s32.totalorder %s4981_s25, %s4981_s25 }
 0x980   :  { %1064 = vrot.lane.b32.xlu1 %v1045_v55, %s5057_s10  ;;  %p4988_p9 = por %p4987_p8, %p4986_p7 }
 0x982   :  { %p4989_p10 = pnand %p4988_p9, %p4982_p6 }
 0x9e2   :  { %v3844_v48 = vpop.xlane.xlu0 %3843 }
 0x9e3   :  { %v3848_v50 = vmul.f32 0.00390625, %v3844_v48 }
 0x9e4   :  { %v3847_v56 = vpop.xlane.xlu1 %3846 }
 0x9e5   :  { %v5514_v26 = vsub.f32 %v3836_v42, %v3848_v50  ;;  %v5516_v44 = vsub.f32 %v3837_v27, %v3848_v50  ;;  %v3849_v20 = vmul.f32 0.00390625, %v3847_v56 }
 0x9e6   :  { %v1359_v52 = vpop.permute.xlu0 %1358 }
 0x9e7   :  { %v5518_v57 = vsub.f32 %v3838_v35, %v3849_v20  ;;  %v5520_v58 = vsub.f32 %v3839_v7, %v3849_v20  ;;  %v3854_v60 = vmul.f32 %v5514_v26, %v5514_v26  ;;  %v3855_v53 = vmul.f32 %v5516_v44, %v5516_v44 }
 0x9e8   :  { %v1363_v61 = vpop.permute.xlu1 %1362  ;;  %v1385_v10 = vsel %vm958_vm2, %v1329_v16, %v1359_v52 }
 0x9e9   :  { %v3856_v54 = vmul.f32 %v5518_v57, %v5518_v57  ;;  %v3857_v34 = vmul.f32 %v5520_v58, %v5520_v58  ;;  %v3858_v62 = vadd.f32 %v3855_v53, %v3854_v60  ;;  %v1386_v18 = vsel %vm1076_vm3, %v1385_v10, %v1363_v61 }
 0x9ea   :  { %v1375_v63 = vpop.permute.xlu0 %1374 }
 0x9eb   :  { %v3861_v3 = vadd.f32 %v3857_v34, %v3856_v54  ;;  %3859 = vadd.xlane.f32.xlu1 %v3858_v62 }
 0x9ec   :  { %v1367_v0 = vpop.permute.xlu1 %1366 }
 0x9ed   :  { %3862 = vadd.xlane.f32.xlu0 %v3861_v3  ;;  %v1387_v21 = vsel %vm1078_vm4, %v1386_v18, %v1367_v0 }
 0x9ee   :  { %v1383_v4 = vpop.permute.xlu0 %1382 }
 0x9f0   :  { %v1371_v2 = vpop.permute.xlu1 %1370 }
 0x9f1   :  { %v1388_v25 = vsel %vm1080_vm5, %v1387_v21, %v1371_v2 }
 0x9f2   :  { %v1049_v5 = vpop.permute.xlu0 %1048  ;;  %v1389_v37 = vsel %vm1082_vm6, %v1388_v25, %v1375_v63 }
 0x9f3   :  { %v1075_v12 = vsel %vm958_vm2, %v1019_v28, %v1049_v5 }
 0x9f4   :  { %v1379_v45 = vpop.permute.xlu1 %1378 }
 0x9f5   :  { %v1390_v42 = vsel %vm1084_vm7, %v1389_v37, %v1379_v45 }
 0x9f6   :  { %v1061_v6 = vpop.permute.xlu0 %1060  ;;  %v1391_v38 = vsel %vm1086_vm8, %v1390_v42, %v1383_v4 }
 0x9f8   :  { %v1053_v8 = vpop.permute.xlu1 %1052 }
 0x9f9   :  { %v1077_v14 = vsel %vm1076_vm3, %v1075_v12, %v1053_v8 }
 0x9fc   :  { %v1057_v17 = vpop.permute.xlu1 %1056  ;;  %1072 = vrot.lane.b32.xlu1 %v1046_v13, %s5058_s20 }
 0x9fd   :  { %v1079_v19 = vsel %vm1078_vm4, %v1077_v14, %v1057_v17 }
 0x9fe   :  { %v1081_v22 = vsel %vm1080_vm5, %v1079_v19, %v1061_v6 }
 0xa00   :  { %v1065_v59 = vpop.permute.xlu1 %1064 }
 0xa01   :  { %v1083_v33 = vsel %vm1082_vm6, %v1081_v22, %v1065_v59 }
 0xa03   :  { %1068 = vrot.lane.b32.xlu0 %v5335_v1, %s5059_s22 }
 0xa07   :  { %1487 = vrot.lane.b32.xlu0 %v1391_v38, %s5060_s24 }
 0xa78   :  { %v3860_v43 = vpop.xlane.xlu1 %3859 }
 0xa79   :  { %v3864_v9 = vmul.f32 0.00390625, %v3860_v43 }
 0xa7a   :  { %v3863_v27 = vpop.xlane.xlu0 %3862 }
 0xa7b   :  { %v3865_v24 = vmul.f32 0.00390625, %v3863_v27  ;;  %v3866_v35 = vadd.f32 1e-06, %v3864_v9 }
 0xa7c   :  { %v1073_v1 = vpop.permute.xlu1 %1072 }
 0xa7d   :  { %v3867_v7 = vadd.f32 1e-06, %v3865_v24  ;;  %4841 = vrsqrt.f32 %v3866_v35 }
 0xa7e   :  { %v1069_v11 = vpop.permute.xlu0 %1068 }
 0xa7f   :  { %4843 = vrsqrt.f32 %v3867_v7  ;;  %v1085_v23 = vsel %vm1084_vm7, %v1083_v33, %v1069_v11 }
 0xa80   :  { %v1087_v16 = vsel %vm1086_vm8, %v1085_v23, %v1073_v1 }
 0xa82   :  { %v1488_v30 = vpop.permute.xlu0 %1487 }
 0xa83   :  { %v1491_v15 = vsel %vm1490_vm9, %v1087_v16, %v1488_v30 }
 0xa84   :  { %1492 = vst [vmem:[#allocation14] sm:$0x3] %v1491_v15 }
 0xa85   :  { %4992 = shalt.err (!%p4989_p10)
}
 0xa86   :  { %s4993_s29 = scalar_lea.hbm %s5596_s14, 32 }
 0xa87   :  { %p4994_p11 = scmp.ne.s32.totalorder %s5596_s14, %s4993_s29  ;;  %p4997_p12 = scmp.lt.u32.totalorder %s4993_s29, %s5596_s14 }
 0xa89   :  { %p4999_p13 = pnand %p4997_p12, %p4994_p11 }
 0xa8b   :  { %5002 = shalt.err (!%p4999_p13)
}
 0xa8c   :  { %3929 = dma.vmem_to_hbm [thread:$0]  %s3927_s1, 32, %s5596_s14, [#allocation15]   ;;  %v3841_v32 = vld [vmem:[%s5594_s12] sm:$0x3]  ;;  %v3878_v40 = vrot.slane %v3840_v39, %v5245_v49  ;;  %v3882_v29 = vrot.slane %v3840_v39, %v5248_v51  ;;  %v4842_v31 = vpop.eup %4841 }
 0xa8d   :  { %v4844_v28 = vpop.eup %4843  ;;  %v3870_v36 = vmul.f32 %v4842_v31, %v5514_v26  ;;  %v3871_v41 = vmul.f32 %v4842_v31, %v5516_v44  ;;  %v3893_v46 = vrot.slane %v3841_v32, %v5245_v49  ;;  %v3897_v47 = vrot.slane %v3841_v32, %v5248_v51  ;;  %s5062_s12 = smov [#allocation13]  }
 0xa8e   :  { %v3872_v55 = vmul.f32 %v4844_v28, %v5518_v57  ;;  %v3873_v48 = vmul.f32 %v4844_v28, %v5520_v58  ;;  %s3913_s14 = sshll.u32 %s5062_s12, 4  ;;  %s3914_s14 = int_to_ptr.vmem [resolvable:$true] %s3913_s14 }
 0xa8f   :  { %v3885_v50 = vmul.f32 %v3878_v40, %v3870_v36  ;;  %v3886_v56 = vmul.f32 %v3882_v29, %v3871_v41  ;;  %s5003_s17 = scalar_lea.vmem %s3914_s14, 512  ;;  %p5008_p1 = scmp.lt.s32.totalorder %s3914_s14, %s3914_s14 }
 0xa90   :  { %v3887_v20 = vmul.f32 %v3878_v40, %v3872_v55  ;;  %v3888_v52 = vmul.f32 %v3882_v29, %v3873_v48  ;;  %p5004_p0 = scmp.ne.s32.totalorder %s3914_s14, %s5003_s17  ;;  %p5009_p2 = scmp.lt.s32.totalorder %s5003_s17, %s5003_s17 }
 0xa91   :  { %v3900_v60 = vadd.f32 %v3893_v46, %v3885_v50  ;;  %v3901_v61 = vadd.f32 %v3897_v47, %v3886_v56 }
 0xa92   :  { %v3902_v53 = vadd.f32 %v3893_v46, %v3887_v20  ;;  %v3903_v26 = vadd.f32 %v3897_v47, %v3888_v52  ;;  %p5010_p3 = por %p5009_p2, %p5008_p1 }
 0xa93   :  { %3904 = vst [vmem:[#allocation13] sm:$0xff] %v3900_v60  ;;  %3905 = vst [vmem:[#allocation13 + $0x8] sm:$0xff] %v3901_v61 }
 0xa94   :  { %3906 = vst [vmem:[#allocation13 + $0x10] sm:$0xff] %v3902_v53  ;;  %3907 = vst [vmem:[#allocation13 + $0x18] sm:$0xff] %v3903_v26  ;;  %p5011_p4 = pnand %p5010_p3, %p5004_p0 }
 0xa96   :  { %5014 = shalt.err (!%p5011_p4)
}
 0xa97   :  { %s5015_s6 = scalar_lea.hbm %s5595_s13, 512 }
 0xa98   :  { %p5016_p5 = scmp.ne.s32.totalorder %s5595_s13, %s5015_s6  ;;  %p5019_p6 = scmp.lt.u32.totalorder %s5015_s6, %s5595_s13 }
 0xa9a   :  { %p5021_p7 = pnand %p5019_p6, %p5016_p5 }
 0xa9c   :  { %5024 = shalt.err (!%p5021_p7)
}
 0xa9d   :  { %3919 = dma.vmem_to_hbm [thread:$0]  %s3914_s14, 512, %s5595_s13, [#allocation4], %s5042_s4, %s5042_s4, %s5043_s28  }
 0xa9e   :  { %5033 = dma.done.wait [#allocation4], 512  }
 0xa9f   :  { %5034 = vsyncadd [#allocation4], 4294966784 }
 0xaa0   :  { %5035 = dma.done.wait [#allocation15], 32  }
 0xaa1   :  { %5036 = vsyncadd [#allocation15], 4294967264 }
 0xaa2   :  { %3936 = vsyncpa [#allocation3], 1 }
 0xaa3   :  { %3937 = vsyncpa [#allocation6], 1 }
 0xaa4   :  { %3938 = vsyncpa [#allocation9], 1 }
 0xaa5   :  { %3939 = vsyncpa [#allocation12], 1 }
 0xaa6   :  { %3940 = vsyncpa [#allocation4], 1 }
 0xaa7   :  { %3941 = vsyncpa [#allocation15], 1 }

</bundles_post_ra>
